<compile_context>
chip_gen: v6e
topology: v6e:2x2x1
jax: 0.10.0
libtpu: 0.0.40
codegen_flags: <defaults>
</compile_context>

<pallas_src>
import functools

import jax
import jax.numpy as jnp
from jax.experimental import pallas as pl
from jax.experimental.pallas import tpu as pltpu


def _round_up(n, m):
    return pl.cdiv(n, m) * m


def _vmem_capacity_bytes():
    """Physical VMEM per TensorCore; conservative fallback if query unavailable."""
    try:
        return int(pltpu.get_tpu_info().vmem_capacity_bytes)
    except Exception:
        return 64 * 1024 * 1024  # v7x per-TC size; safe lower bound everywhere


def _moe_adaptor_kernel(x_ref, wall_ref, c_ref, o_ref, *,
                        n_exps, d_out_p, gate_off, exp_base, chunk):
    """Per batch tile:
         y     = x @ [ gate cols | W_0 | ... | W_{E-1} ]   (one wide MXU matmul, f32 acc)
         gates = softmax(y[:, gate_off:gate_off+E])        (f32 VPU/EUP)
         out   = sum_i gates_i * (y_i - C_i)               (chunked VPU epilogue)
       with C_i = b_i @ W_i precomputed ((x-b)@W = x@W - b@W)."""
    x = x_ref[...]                                           # (tb, Din), matmul dtype

    # One wide MXU matmul: gate logits + every expert output, f32 accumulation.
    y = jnp.dot(x, wall_ref[...], preferred_element_type=jnp.float32)

    # --- gating softmax over E lanes (all f32 elementwise) --------------------
    logits = y[:, gate_off:gate_off + n_exps]                # (tb, E)
    m = jnp.max(logits, axis=-1, keepdims=True)
    e = jnp.exp(logits - m)
    gates = e / jnp.sum(e, axis=-1, keepdims=True)           # (tb, E) f32

    # --- chunked weighted sum: one (tb, chunk) accumulator live at a time,
    #     each finished lane-dense chunk written straight to o_ref. ------------
    for lo in range(0, d_out_p, chunk):                      # static unroll
        hi = min(lo + chunk, d_out_p)
        acc = jnp.zeros((x.shape[0], hi - lo), jnp.float32)
        for i in range(n_exps):                              # static unroll (E small)
            col = exp_base + i * d_out_p + lo
            acc = acc + gates[:, i:i + 1] * (y[:, col:col + (hi - lo)]
                                             - c_ref[i:i + 1, lo:hi])
        o_ref[:, lo:hi] = acc.astype(o_ref.dtype)


def prepare_moe_adaptor(w_gate, biases, w_exp, *, matmul_dtype=jnp.bfloat16):
    """Build the fused RHS and bias correction ONCE (hoisted out of the forward).

    w_gate: [Din, E], biases: [E, Din], w_exp: [E, Din, Dout]  (W_i = lin.weight^T).
    Returns (W_all, C, meta)."""
    f32 = jnp.float32
    Din, E = w_gate.shape
    Dout = w_exp.shape[-1]
    Dout_p = _round_up(Dout, 128)                 # lane-dense expert/output width

    w_exp_p = w_exp if Dout_p == Dout else jnp.pad(
        w_exp, ((0, 0), (0, 0), (0, Dout_p - Dout)))

    # Correction C[i] = b_i @ W_i (f32 / HIGHEST).
    C = jnp.einsum('ed,edo->eo', biases.astype(f32), w_exp_p.astype(f32),
                   precision=jax.lax.Precision.HIGHEST)       # (E, Dout_p)

    cols = jnp.transpose(w_exp_p, (1, 0, 2)).reshape(Din, E * Dout_p).astype(f32)

    if Dout_p - Dout >= E:
        # Pack the E gate columns into expert 0's padding lanes -> no wasted slab.
        # (Output padding lanes get gate-contaminated; the wrapper's [:, :Dout]
        #  slice discards them.)
        W_all = cols.at[:, Dout:Dout + E].set(w_gate.astype(f32)).astype(matmul_dtype)
        gate_off, exp_base, n_cols = Dout, 0, E * Dout_p
    else:
        # Dedicated lane-aligned gate slab in front.
        # TODO(synk): could size the slab so n_cols is 256-aligned for v6e/v7x MXU passes.
        gpad = 128
        gate_cols = jnp.zeros((Din, gpad), f32).at[:, :E].set(w_gate.astype(f32))
        W_all = jnp.concatenate([gate_cols, cols], axis=1).astype(matmul_dtype)
        gate_off, exp_base, n_cols = 0, gpad, gpad + E * Dout_p

    meta = dict(n_exps=E, d_in=Din, d_out=Dout, d_out_p=Dout_p,
                gate_off=gate_off, exp_base=exp_base, n_cols=n_cols)
    return W_all, C, meta


def moe_adaptor_apply(x, W_all, C, meta, *, tb=None):
    """x: [B, Din]; (W_all, C, meta) from prepare_moe_adaptor. Returns [B, Dout]."""
    B, Din = x.shape
    E, Dout, Dout_p = meta['n_exps'], meta['d_out'], meta['d_out_p']
    n_cols = meta['n_cols']
    assert Din == meta['d_in'] and W_all.shape == (Din, n_cols)

    mm_dtype = jnp.dtype(W_all.dtype)
    mm_bytes = mm_dtype.itemsize
    out_bytes = jnp.dtype(x.dtype).itemsize
    chunk = min(256, Dout_p)

    # Sublane-pack granularity of the LHS batch tile (8 f32 / 16 bf16 / 32 8-bit).
    gran = {4: 8, 2: 16, 1: 32}.get(mm_bytes, 8)

    # VMEM budget: physical capacity minus compiler-scratch headroom
    # (v7x 64 MiB -> ~52 MiB; v5e/v6e 128 MiB -> ~112 MiB).
    cap = _vmem_capacity_bytes()
    budget = cap - ((12 << 20) if cap <= (64 << 20) else (16 << 20))

    # Resident operands (constant index_map -> never re-DMA'd): single-buffer
    # them to halve their VMEM footprint, if this jax build supports it.
    def _resident_specs(single):
        if single:
            return [pl.BlockSpec((Din, n_cols), lambda i: (0, 0),
                                 pipeline_mode=pl.Buffered(1)),
                    pl.BlockSpec((E, Dout_p), lambda i: (0, 0),
                                 pipeline_mode=pl.Buffered(1))]
        return [pl.BlockSpec((Din, n_cols), lambda i: (0, 0)),
                pl.BlockSpec((E, Dout_p), lambda i: (0, 0))]

    try:
        _resident_specs(True)
        single_ok, w_bufs = True, 1
    except (TypeError, AttributeError):   # pipeline_mode / Buffered unavailable
        single_ok, w_bufs = False, 2

    resident = w_bufs * (Din * n_cols * mm_bytes + E * Dout_p * 4)
    per_row = (2 * Din * mm_bytes          # double-buffered x tile
               + 2 * Dout_p * out_bytes    # double-buffered output tile
               + n_cols * 4                # f32 wide matmul result
               + 4 * chunk * 4)            # epilogue temporaries
    avail = max(budget - resident - (4 << 20), per_row * gran)
    tb_mem = max(gran, (int(avail // per_row) // gran) * gran)

    if tb is None:
        # >=2 grid steps whenever B permits so a 'parallel' batch axis actually
        # covers both v7x TensorCores; larger tiles amortize per-step overhead.
        tb = _round_up(max(pl.cdiv(B, 2), gran), gran)
    tb = max(gran, _round_up(tb, gran))
    tb = min(tb, 256, tb_mem)

    B_p = _round_up(B, tb)
    x_p = x if B_p == B else jnp.pad(x, ((0, B_p - B), (0, 0)))
    x_mm = x_p.astype(mm_dtype)

    cost = pl.CostEstimate(
        flops=2 * B_p * Din * n_cols + 3 * B_p * E * Dout_p,
        transcendentals=B_p * E,
        bytes_accessed=(B_p * Din + Din * n_cols) * mm_bytes
                       + E * Dout_p * 4 + B_p * Dout_p * out_bytes,
    )

    kernel = functools.partial(_moe_adaptor_kernel, n_exps=E, d_out_p=Dout_p,
                               gate_off=meta['gate_off'], exp_base=meta['exp_base'],
                               chunk=chunk)

    def _call(single):
        bufs = 1 if single else 2
        est = bufs * (Din * n_cols * mm_bytes + E * Dout_p * 4) + tb * per_row
        vmem_limit = int(min(max(int(1.25 * est), 32 << 20), budget))
        return pl.pallas_call(
            kernel,
            out_shape=jax.ShapeDtypeStruct((B_p, Dout_p), x.dtype),
            grid_spec=pltpu.PrefetchScalarGridSpec(
                num_scalar_prefetch=0,
                grid=(B_p // tb,),
                in_specs=[pl.BlockSpec((tb, Din), lambda i: (i, 0))]
                         + _resident_specs(single),
                out_specs=pl.BlockSpec((tb, Dout_p), lambda i: (i, 0)),
            ),
            compiler_params=pltpu.CompilerParams(
                dimension_semantics=("parallel",),
                vmem_limit_bytes=vmem_limit),
            cost_estimate=cost,
        )(x_mm, W_all, C)

    if single_ok:
        try:
            out = _call(True)
        except Exception:  # pragma: no cover — Buffered(1) not lowerable in this build
            out = _call(False)
    else:
        out = _call(False)

    return out[:B, :Dout]


def moe_adaptor(x, w_gate, biases, w_exp, *, tb=None, matmul_dtype=jnp.bfloat16):
    """One-shot convenience wrapper.  For repeated forward calls, invoke
    prepare_moe_adaptor(...) once and reuse (W_all, C, meta) with moe_adaptor_apply."""
    W_all, C, meta = prepare_moe_adaptor(w_gate, biases, w_exp, matmul_dtype=matmul_dtype)
    return moe_adaptor_apply(x, W_all, C, meta, tb=tb)


def moe_adaptor_ref(x, w_gate, biases, w_exp):
    hi = jax.lax.Precision.HIGHEST
    gates = jax.nn.softmax(jnp.dot(x, w_gate, precision=hi), axis=-1)   # [B, E]
    xb = x[:, None, :] - biases[None, :, :]                             # [B, E, Din]
    expert_out = jnp.einsum('bed,edo->beo', xb, w_exp, precision=hi)    # [B, E, Dout]
    return jnp.sum(gates[..., None] * expert_out, axis=-2)              # [B, Dout]


if __name__ == "__main__":
    def make_params(seed, E, Din, Dout):
        kx, kw, kg, kb = jax.random.split(jax.random.PRNGKey(seed), 4)
        # PWLayer: lin.weight ~ N(0, 0.02); bias non-zero so the correction path
        # is exercised; gate small-random.
        w_lin = 0.02 * jax.random.normal(kw, (E, Dout, Din), jnp.float32)
        w_exp = jnp.transpose(w_lin, (0, 2, 1))                          # [E, Din, Dout]
        biases = 0.1 * jax.random.normal(kb, (E, Din), jnp.float32)
        w_gate = 0.02 * jax.random.normal(kg, (Din, E), jnp.float32)
        return kx, w_gate, biases, w_exp

    # --- Config A: Dout multiple of 128 (dedicated gate-slab layout) -----------
    B, D_IN, D_OUT, N_EXPS = 32, 128, 256, 3
    kx, w_gate, biases, w_exp = make_params(0, N_EXPS, D_IN, D_OUT)
    x = jax.random.normal(kx, (B, D_IN), jnp.float32)
    ref = moe_adaptor_ref(x, w_gate, biases, w_exp)

    # f32 MXU path (weights prepared once, reused by the apply call).
    W_all32, C32, meta32 = prepare_moe_adaptor(w_gate, biases, w_exp,
                                               matmul_dtype=jnp.float32)
    out_f32 = jax.block_until_ready(moe_adaptor_apply(x, W_all32, C32, meta32))
    assert out_f32.shape == (B, D_OUT)
    assert jnp.allclose(out_f32, ref, atol=3e-3, rtol=3e-3), "f32 mismatch vs reference"

    # Default bf16-input MXU path (f32 softmax / accumulation).
    out_bf16 = jax.block_until_ready(moe_adaptor(x, w_gate, biases, w_exp))
    assert out_bf16.shape == (B, D_OUT)
    assert jnp.allclose(out_bf16, ref, atol=2e-2, rtol=2e-2), "bf16 mismatch vs reference"

    # --- Config B: Dout not a multiple of 128 (gate columns packed into padding,
    #     batch padded too) ------------------------------------------------------
    B2, D_IN2, D_OUT2, N_EXPS2 = 20, 96, 200, 4
    kx2, w_gate2, biases2, w_exp2 = make_params(1, N_EXPS2, D_IN2, D_OUT2)
    x2 = jax.random.normal(kx2, (B2, D_IN2), jnp.float32)
    ref2 = moe_adaptor_ref(x2, w_gate2, biases2, w_exp2)
    out2 = jax.block_until_ready(
        moe_adaptor(x2, w_gate2, biases2, w_exp2, matmul_dtype=jnp.float32))
    assert out2.shape == (B2, D_OUT2)
    assert jnp.allclose(out2, ref2, atol=3e-3, rtol=3e-3), "packed-gate path mismatch"

    print("KERNEL_OK")
</pallas_src>

<mosaic_0001>
module attributes {stable_mosaic.version = 11 : i64} {
  func.func @_moe_adaptor_kernel(%arg0: i32, %arg1: memref<16x128xf32, #tpu.memory_space<vmem>>, %arg2: memref<128x896xf32, #tpu.memory_space<vmem>>, %arg3: memref<3x256xf32, #tpu.memory_space<vmem>>, %arg4: memref<16x256xf32, #tpu.memory_space<vmem>>) attributes {dimension_semantics = [#tpu.dimension_semantics<parallel>], iteration_bounds = array<i64: 2>, scalar_prefetch = 0 : i64, scratch_operands = 0 : i64, tpu.core_type = #tpu.core_type<tc>, window_params = [{transform_indices = @transform_0, window_bounds = array<i64: 16, 128>}, {pipeline_mode = #tpu.pipeline_mode<synchronous>, transform_indices = @transform_1, window_bounds = array<i64: 128, 896>}, {pipeline_mode = #tpu.pipeline_mode<synchronous>, transform_indices = @transform_2, window_bounds = array<i64: 3, 256>}, {transform_indices = @transform_3, window_bounds = array<i64: 16, 256>}]} {
    %c0 = arith.constant 0 : index
    %c0_0 = arith.constant 0 : index
    %0 = vector.load %arg1[%c0, %c0_0] : memref<16x128xf32, #tpu.memory_space<vmem>>, vector<16x128xf32>
    %c0_1 = arith.constant 0 : index
    %c0_2 = arith.constant 0 : index
    %1 = vector.load %arg2[%c0_1, %c0_2] : memref<128x896xf32, #tpu.memory_space<vmem>>, vector<128x896xf32>
    %cst = arith.constant dense<0.000000e+00> : vector<16x896xf32>
    %2 = tpu.matmul %0, %1, %cst {dimension_numbers = #tpu.dot_dimension_numbers<[1], [0], [0], [1], [0, 0, 1, 1], [], []>} : vector<16x128xf32>, vector<128x896xf32>, vector<16x896xf32> -> vector<16x896xf32>
    %3 = vector.extract_strided_slice %2 {offsets = [0, 0], sizes = [16, 3], strides = [1, 1]} : vector<16x896xf32> to vector<16x3xf32>
    %cst_3 = arith.constant dense<0xFF800000> : vector<16xf32>
    %4 = vector.multi_reduction <maximumf>, %3, %cst_3 [1] : vector<16x3xf32> to vector<16xf32>
    %5 = vector.shape_cast %4 : vector<16xf32> to vector<16x1xf32>
    %6 = vector.broadcast %5 : vector<16x1xf32> to vector<16x3xf32>
    %7 = arith.subf %3, %6 : vector<16x3xf32>
    %8 = math.exp %7 : vector<16x3xf32>
    %cst_4 = arith.constant dense<0.000000e+00> : vector<16xf32>
    %9 = vector.multi_reduction <add>, %8, %cst_4 [1] : vector<16x3xf32> to vector<16xf32>
    %10 = vector.shape_cast %9 : vector<16xf32> to vector<16x1xf32>
    %11 = vector.broadcast %10 : vector<16x1xf32> to vector<16x3xf32>
    %12 = arith.divf %8, %11 : vector<16x3xf32>
    %cst_5 = arith.constant 0.000000e+00 : f32
    %13 = vector.broadcast %cst_5 : f32 to vector<16x256xf32>
    %14 = vector.extract_strided_slice %12 {offsets = [0, 0], sizes = [16, 1], strides = [1, 1]} : vector<16x3xf32> to vector<16x1xf32>
    %15 = vector.extract_strided_slice %2 {offsets = [0, 128], sizes = [16, 256], strides = [1, 1]} : vector<16x896xf32> to vector<16x256xf32>
    %c0_6 = arith.constant 0 : index
    %c0_7 = arith.constant 0 : index
    %16 = vector.load %arg3[%c0_6, %c0_7] : memref<3x256xf32, #tpu.memory_space<vmem>>, vector<1x256xf32>
    %17 = vector.broadcast %16 : vector<1x256xf32> to vector<16x256xf32>
    %18 = arith.subf %15, %17 : vector<16x256xf32>
    %19 = vector.broadcast %14 : vector<16x1xf32> to vector<16x256xf32>
    %20 = arith.mulf %19, %18 : vector<16x256xf32>
    %21 = arith.addf %13, %20 : vector<16x256xf32>
    %22 = vector.extract_strided_slice %12 {offsets = [0, 1], sizes = [16, 1], strides = [1, 1]} : vector<16x3xf32> to vector<16x1xf32>
    %23 = vector.extract_strided_slice %2 {offsets = [0, 384], sizes = [16, 256], strides = [1, 1]} : vector<16x896xf32> to vector<16x256xf32>
    %c1 = arith.constant 1 : index
    %c0_8 = arith.constant 0 : index
    %24 = vector.load %arg3[%c1, %c0_8] : memref<3x256xf32, #tpu.memory_space<vmem>>, vector<1x256xf32>
    %25 = vector.broadcast %24 : vector<1x256xf32> to vector<16x256xf32>
    %26 = arith.subf %23, %25 : vector<16x256xf32>
    %27 = vector.broadcast %22 : vector<16x1xf32> to vector<16x256xf32>
    %28 = arith.mulf %27, %26 : vector<16x256xf32>
    %29 = arith.addf %21, %28 : vector<16x256xf32>
    %30 = vector.extract_strided_slice %12 {offsets = [0, 2], sizes = [16, 1], strides = [1, 1]} : vector<16x3xf32> to vector<16x1xf32>
    %31 = vector.extract_strided_slice %2 {offsets = [0, 640], sizes = [16, 256], strides = [1, 1]} : vector<16x896xf32> to vector<16x256xf32>
    %c2 = arith.constant 2 : index
    %c0_9 = arith.constant 0 : index
    %32 = vector.load %arg3[%c2, %c0_9] : memref<3x256xf32, #tpu.memory_space<vmem>>, vector<1x256xf32>
    %33 = vector.broadcast %32 : vector<1x256xf32> to vector<16x256xf32>
    %34 = arith.subf %31, %33 : vector<16x256xf32>
    %35 = vector.broadcast %30 : vector<16x1xf32> to vector<16x256xf32>
    %36 = arith.mulf %35, %34 : vector<16x256xf32>
    %37 = arith.addf %29, %36 : vector<16x256xf32>
    %c0_10 = arith.constant 0 : index
    %c0_11 = arith.constant 0 : index
    %38 = vector.load %arg4[%c0_10, %c0_11] : memref<16x256xf32, #tpu.memory_space<vmem>>, vector<16x256xf32>
    tpu.vector_store %arg4[%c0_10, %c0_11], %37 {strides = array<i32>} : memref<16x256xf32, #tpu.memory_space<vmem>>, vector<16x256xf32>,
    return
  }
  func.func @transform_0(%arg0: i32) -> (i32, i32) {
    %c0_i32 = arith.constant 0 : i32
    %c0_i32_0 = arith.constant 0 : i32
    return %arg0, %c0_i32 : i32, i32
  }
  func.func @transform_1(%arg0: i32) -> (i32, i32) {
    %c0_i32 = arith.constant 0 : i32
    %c0_i32_0 = arith.constant 0 : i32
    %c0_i32_1 = arith.constant 0 : i32
    return %c0_i32, %c0_i32_0 : i32, i32
  }
  func.func @transform_2(%arg0: i32) -> (i32, i32) {
    %c0_i32 = arith.constant 0 : i32
    %c0_i32_0 = arith.constant 0 : i32
    %c0_i32_1 = arith.constant 0 : i32
    return %c0_i32, %c0_i32_0 : i32, i32
  }
  func.func @transform_3(%arg0: i32) -> (i32, i32) {
    %c0_i32 = arith.constant 0 : i32
    %c0_i32_0 = arith.constant 0 : i32
    return %arg0, %c0_i32 : i32, i32
  }
}

module attributes {stable_mosaic.version = 11 : i64} {
  func.func @_moe_adaptor_kernel(%arg0: i32, %arg1: memref<16x128xf32, #tpu.memory_space<vmem>>, %arg2: memref<128x896xf32, #tpu.memory_space<vmem>>, %arg3: memref<3x256xf32, #tpu.memory_space<vmem>>, %arg4: memref<16x256xf32, #tpu.memory_space<vmem>>) attributes {dimension_semantics = [#tpu.dimension_semantics<parallel>], iteration_bounds = array<i64: 2>, scalar_prefetch = 0 : i64, scratch_operands = 0 : i64, tpu.core_type = #tpu.core_type<tc>, window_params = [{transform_indices = @transform_0, window_bounds = array<i64: 16, 128>}, {pipeline_mode = #tpu.pipeline_mode<synchronous>, transform_indices = @transform_1, window_bounds = array<i64: 128, 896>}, {pipeline_mode = #tpu.pipeline_mode<synchronous>, transform_indices = @transform_2, window_bounds = array<i64: 3, 256>}, {transform_indices = @transform_3, window_bounds = array<i64: 16, 256>}]} {
    %c0 = arith.constant 0 : index
    %c0_0 = arith.constant 0 : index
    %0 = vector.load %arg1[%c0, %c0_0] : memref<16x128xf32, #tpu.memory_space<vmem>>, vector<16x128xf32>
    %c0_1 = arith.constant 0 : index
    %c0_2 = arith.constant 0 : index
    %1 = vector.load %arg2[%c0_1, %c0_2] : memref<128x896xf32, #tpu.memory_space<vmem>>, vector<128x896xf32>
    %cst = arith.constant dense<0.000000e+00> : vector<16x896xf32>
    %2 = tpu.matmul %0, %1, %cst {dimension_numbers = #tpu.dot_dimension_numbers<[1], [0], [0], [1], [0, 0, 1, 1], [], []>} : vector<16x128xf32>, vector<128x896xf32>, vector<16x896xf32> -> vector<16x896xf32>
    %3 = vector.extract_strided_slice %2 {offsets = [0, 0], sizes = [16, 3], strides = [1, 1]} : vector<16x896xf32> to vector<16x3xf32>
    %cst_3 = arith.constant dense<0xFF800000> : vector<16xf32>
    %4 = vector.multi_reduction <maximumf>, %3, %cst_3 [1] : vector<16x3xf32> to vector<16xf32>
    %5 = vector.shape_cast %4 : vector<16xf32> to vector<16x1xf32>
    %6 = vector.broadcast %5 : vector<16x1xf32> to vector<16x3xf32>
    %7 = arith.subf %3, %6 : vector<16x3xf32>
    %8 = math.exp %7 : vector<16x3xf32>
    %cst_4 = arith.constant dense<0.000000e+00> : vector<16xf32>
    %9 = vector.multi_reduction <add>, %8, %cst_4 [1] : vector<16x3xf32> to vector<16xf32>
    %10 = vector.shape_cast %9 : vector<16xf32> to vector<16x1xf32>
    %11 = vector.broadcast %10 : vector<16x1xf32> to vector<16x3xf32>
    %12 = arith.divf %8, %11 : vector<16x3xf32>
    %cst_5 = arith.constant 0.000000e+00 : f32
    %13 = vector.broadcast %cst_5 : f32 to vector<16x256xf32>
    %14 = vector.extract_strided_slice %12 {offsets = [0, 0], sizes = [16, 1], strides = [1, 1]} : vector<16x3xf32> to vector<16x1xf32>
    %15 = vector.extract_strided_slice %2 {offsets = [0, 128], sizes = [16, 256], strides = [1, 1]} : vector<16x896xf32> to vector<16x256xf32>
    %c0_6 = arith.constant 0 : index
    %c0_7 = arith.constant 0 : index
    %16 = vector.load %arg3[%c0_6, %c0_7] : memref<3x256xf32, #tpu.memory_space<vmem>>, vector<1x256xf32>
    %17 = vector.broadcast %16 : vector<1x256xf32> to vector<16x256xf32>
    %18 = arith.subf %15, %17 : vector<16x256xf32>
    %19 = vector.broadcast %14 : vector<16x1xf32> to vector<16x256xf32>
    %20 = arith.mulf %19, %18 : vector<16x256xf32>
    %21 = arith.addf %13, %20 : vector<16x256xf32>
    %22 = vector.extract_strided_slice %12 {offsets = [0, 1], sizes = [16, 1], strides = [1, 1]} : vector<16x3xf32> to vector<16x1xf32>
    %23 = vector.extract_strided_slice %2 {offsets = [0, 384], sizes = [16, 256], strides = [1, 1]} : vector<16x896xf32> to vector<16x256xf32>
    %c1 = arith.constant 1 : index
    %c0_8 = arith.constant 0 : index
    %24 = vector.load %arg3[%c1, %c0_8] : memref<3x256xf32, #tpu.memory_space<vmem>>, vector<1x256xf32>
    %25 = vector.broadcast %24 : vector<1x256xf32> to vector<16x256xf32>
    %26 = arith.subf %23, %25 : vector<16x256xf32>
    %27 = vector.broadcast %22 : vector<16x1xf32> to vector<16x256xf32>
    %28 = arith.mulf %27, %26 : vector<16x256xf32>
    %29 = arith.addf %21, %28 : vector<16x256xf32>
    %30 = vector.extract_strided_slice %12 {offsets = [0, 2], sizes = [16, 1], strides = [1, 1]} : vector<16x3xf32> to vector<16x1xf32>
    %31 = vector.extract_strided_slice %2 {offsets = [0, 640], sizes = [16, 256], strides = [1, 1]} : vector<16x896xf32> to vector<16x256xf32>
    %c2 = arith.constant 2 : index
    %c0_9 = arith.constant 0 : index
    %32 = vector.load %arg3[%c2, %c0_9] : memref<3x256xf32, #tpu.memory_space<vmem>>, vector<1x256xf32>
    %33 = vector.broadcast %32 : vector<1x256xf32> to vector<16x256xf32>
    %34 = arith.subf %31, %33 : vector<16x256xf32>
    %35 = vector.broadcast %30 : vector<16x1xf32> to vector<16x256xf32>
    %36 = arith.mulf %35, %34 : vector<16x256xf32>
    %37 = arith.addf %29, %36 : vector<16x256xf32>
    %c0_10 = arith.constant 0 : index
    %c0_11 = arith.constant 0 : index
    %38 = vector.load %arg4[%c0_10, %c0_11] : memref<16x256xf32, #tpu.memory_space<vmem>>, vector<16x256xf32>
    tpu.vector_store %arg4[%c0_10, %c0_11], %37 {strides = array<i32>} : memref<16x256xf32, #tpu.memory_space<vmem>>, vector<16x256xf32>,
    return
  }
  func.func @transform_0(%arg0: i32) -> (i32, i32) {
    %c0_i32 = arith.constant 0 : i32
    %c0_i32_0 = arith.constant 0 : i32
    return %arg0, %c0_i32 : i32, i32
  }
  func.func @transform_1(%arg0: i32) -> (i32, i32) {
    %c0_i32 = arith.constant 0 : i32
    %c0_i32_0 = arith.constant 0 : i32
    %c0_i32_1 = arith.constant 0 : i32
    return %c0_i32, %c0_i32_0 : i32, i32
  }
  func.func @transform_2(%arg0: i32) -> (i32, i32) {
    %c0_i32 = arith.constant 0 : i32
    %c0_i32_0 = arith.constant 0 : i32
    %c0_i32_1 = arith.constant 0 : i32
    return %c0_i32, %c0_i32_0 : i32, i32
  }
  func.func @transform_3(%arg0: i32) -> (i32, i32) {
    %c0_i32 = arith.constant 0 : i32
    %c0_i32_0 = arith.constant 0 : i32
    return %arg0, %c0_i32 : i32, i32
  }
}

</mosaic_0001>

<bundles_post_ra>
// kernel: tpu_custom_call.1
= control target key start
LH: loop header
LB: loop body
LE: loop exit
PB: predicated region body
PF: predicated region fallthrough
CT: control target
= control target key end

     0   :  { %8 = vsyncpa [#allocation3], 0  ;;  %s1449_s0 = inlined_call_operand.hbm [shape: f32[32,128], index: 0, kind: input, shape index: {}]   ;;  %s1450_s1 = inlined_call_operand.hbm [shape: f32[128,896], index: 1, kind: input, shape index: {}]   ;;  %s1451_s2 = inlined_call_operand.hbm [shape: f32[3,256], index: 2, kind: input, shape index: {}]   ;;  %s1452_s3 = inlined_call_operand.hbm [shape: f32[32,256], index: 3, kind: output, shape index: {}]  }
   0x1   :  { %10 = vsyncpa [#allocation3 + $0x1], 0 }
   0x2   :  { %11 = vsyncpa [#allocation6], 0 }
   0x3   :  { %12 = vsyncpa [#allocation4], 0 }
   0x4   :  { %14 = vsyncpa [#allocation4 + $0x1], 0  ;;  %s1223_s12 = smov 0   ;;  %s1225_s13 = smov 0  }
   0x5   :  { %s1227_s14 = smov 0   ;;  %s1229_s15 = smov 0  }
   0x6 LB: > { %s1244_s16 = sadd.s32 4294967295, %s1187_s15   ;;  %s872_s17 = sadd.s32 4294967294, %s1187_s15   ;;  %s1187_s15 = sphi %s1229_s15, %s1474_s15   ;;  %s1183_s14 = sphi %s1227_s14, %s1473_s14   ;;  %s1179_s13 = sphi %s1225_s13, %s1472_s13   ;;  %s1175_s12 = sphi %s1223_s12, %s1471_s12  }
   0x7   : > { %p40_p0 = scmp.ne.s32.totalorder %s1179_s13, %s1175_s12  ;;  %p1453_p1 = scmp.eq.s32.totalorder %s1244_s16, 0 }
   0x8   : > { %p112_p3 = scmp.eq.s32.totalorder %s872_s17, 1  ;;  %p873_p5 = scmp.ge.s32.totalorder %s1187_s15, 1 }
   0x9   : > { %p1253_p4 = por %p1453_p1, %p40_p0  ;;  %p119_p7 = scmp.lt.s32.totalorder %s1187_s15, 3 }
   0xa   : > { %p1258_p6 = por %p112_p3, %p40_p0  ;;  %s1189_s21 = smov [#allocation5]  }
   0xb   : > { %s1457_s18 = scalar_select %p1253_p4, 1, 0 }
   0xc   : > { %s1458_s19 = scalar_select %p1258_p6, 1, 0 }
   0xd   : > { %p1263_p8 = pnand %p873_p5, %p119_p7  ;;  %s131_s22 = sshll.u32 %s1189_s21, 4  ;;  %s132_s22 = int_to_ptr.vmem [resolvable:$true] %s131_s22 }
   0xe   : > { %s1190_s24 = smov [#allocation7]   ;;  %s1050_s26 = scalar_lea.vmem %s132_s22, 14336 }
   0xf   : > { %s1459_s20 = scalar_select %p1263_p8, 1, 0 }
  0x10   : > { %p959_p9 = pneg %p1263_p8  ;;  %s145_s25 = sshll.u32 %s1190_s24, 4  ;;  %s146_s25 = int_to_ptr.vmem [resolvable:$true] %s145_s25 }
  0x11   : > { %p1051_p13 = scmp.ne.s32.totalorder %s132_s22, %s1050_s26  ;;  %p1058_p5 = scmp.lt.s32.totalorder %s132_s22, %s132_s22 }
  0x12   : > { %p1272_p11 = pnand %p959_p9, %p1453_p1  ;;  %p1059_p7 = scmp.lt.s32.totalorder %s1050_s26, %s1050_s26 }
  0x14   : > { %p1041_p12 = pneg %p1272_p11  ;;  %p1060_p10 = por %p1059_p7, %p1058_p5 }
  0x16   : > { %p1053_p0 = pnand %p1051_p13, %p1041_p12 }
  0x18   : > { %p1054_p3 = pneg %p1053_p0 }
  0x1a   : > { %p1061_p9 = pnand %p1060_p10, %p1054_p3 }
  0x1c   : > { %1064 = shalt.err (!%p1061_p9)
}
  0x1d   : > { %s1191_s27 = smov 896   ;;  %s1192_s28 = smov 56  }
  0x1e   : > { %962 = dma.hbm_to_vmem [thread:$0]  (!%p1272_p11), %s1450_s1, 14336, %s132_s22, [#allocation6], %s1191_s27, %s1191_s27, %s1192_s28  }
  0x1f   : > { %s1076_s4 = scalar_lea.vmem %s146_s25, 128  ;;  %p1084_p2 = scmp.lt.s32.totalorder %s146_s25, %s146_s25 }
  0x20   : > { %p1077_p1 = scmp.ne.s32.totalorder %s146_s25, %s1076_s4  ;;  %p1085_p6 = scmp.lt.s32.totalorder %s1076_s4, %s1076_s4 }
  0x22   : > { %p1079_p13 = pnand %p1077_p1, %p1041_p12  ;;  %p1086_p5 = por %p1085_p6, %p1084_p2 }
  0x24   : > { %p1080_p0 = pneg %p1079_p13 }
  0x26   : > { %p1087_p10 = pnand %p1086_p5, %p1080_p0 }
  0x28   : > { %1090 = shalt.err (!%p1087_p10)
}
  0x29   : > { %965 = dma.hbm_to_vmem [thread:$0]  (!%p1272_p11), %s1451_s2, 128, %s146_s25, [#allocation6]  }
  0x2a   : > { %s1295_s7 = sadd.s32 1, %s1187_s15   ;;  %s27_s8 = sadd.s32 1, %s1183_s14 }
  0x2b   : > { %s24_s9 = ssub.s32 %s1187_s15, %s1295_s7  ;;  %p34_p1 = scmp.ne.s32.totalorder %s1183_s14, %s1179_s13 }
  0x2c   : > { %p25_p2 = scmp.eq.s32.totalorder %s24_s9, 0  ;;  %p35_p6 = scmp.eq.s32.totalorder %s1187_s15, 0 }
  0x2d   : > { %p1461_p12 = scmp.eq.s32.totalorder %s1244_s16, 1  ;;  %p976_p7 = scmp.lt.s32.totalorder %s1187_s15, 2 }
  0x2e   : > { %s1311_s11 = scalar_select %p25_p2, %s1183_s14, %s27_s8  }
  0x2f   : > { %p1305_p3 = por %p1461_p12, %p34_p1  ;;  %p36_p9 = por %p35_p6, %p34_p1 }
  0x30   : > { %s156_s17 = sand.u32 1, %s1183_s14   ;;  %s891_s22 = sshll.u32 %s1187_s15, 8 }
  0x31   : > { %s1462_s10 = scalar_select %p1305_p3, 1, 0 }
  0x32   : > { %s877_s21 = sshll.u32 %s156_s17, 4  ;;  %s1318_s25 = scalar_lea.hbm %s1449_s0, %s891_s22 }
  0x33   : > { %s160_s26 = scalar_lea.vmem [#allocation2], %s877_s21  ;;  %p1322_p11 = pnand %p976_p7, %p36_p9 }
  0x34   : > { %s167_s27 = sshll.u32 %s160_s26, 4  ;;  %s1326_s29 = scalar_lea.sflag [#allocation3], %s156_s17  ;;  %s1320_s27 = int_to_ptr.vmem [resolvable:$true] %s167_s27 }
  0x35   : > { %s1091_s30 = scalar_lea.hbm %s1318_s25, 256  ;;  %p1093_p0 = pneg %p1322_p11 }
  0x36   : > { %p1092_p13 = scmp.ne.s32.totalorder %s1318_s25, %s1091_s30  ;;  %s1096_s6 = scalar_lea.hbm %s1449_s0, 512 }
  0x37   : > { %p1097_p1 = scmp.lt.s32.totalorder %s1318_s25, %s1449_s0  ;;  %p1098_p2 = scmp.lt.s32.totalorder %s1096_s6, %s1091_s30 }
  0x38   : > { %p1094_p5 = pnand %p1093_p0, %p1092_p13 }
  0x39   : > { %p1099_p6 = por %p1098_p2, %p1097_p1 }
  0x3a   : > { %p1095_p10 = pneg %p1094_p5 }
  0x3c   : > { %p1100_p12 = pnand %p1099_p6, %p1095_p10 }
  0x3e   : > { %1103 = shalt.err (!%p1100_p12)
}
  0x3f   : > { %s1104_s17 = scalar_lea.vmem %s1320_s27, 256  ;;  %s1193_s21 = smov [#allocation2]  }
  0x40   : > { %p1105_p7 = scmp.ne.s32.totalorder %s1320_s27, %s1104_s17  ;;  %s1109_s22 = sshll.u32 %s1193_s21, 4  ;;  %s1110_s22 = int_to_ptr.vmem [resolvable:$false] %s1109_s22 }
  0x41   : > { %s1111_s23 = scalar_lea.vmem %s1110_s22, 512  ;;  %p1112_p5 = scmp.lt.s32.totalorder %s1320_s27, %s1110_s22 }
  0x42   : > { %p1107_p9 = pnand %p1105_p7, %p1093_p0  ;;  %p1113_p3 = scmp.lt.s32.totalorder %s1111_s23, %s1104_s17 }
  0x44   : > { %p1108_p13 = pneg %p1107_p9  ;;  %p1114_p4 = por %p1113_p3, %p1112_p5 }
  0x46   : > { %p1115_p8 = pnand %p1114_p4, %p1108_p13 }
  0x48   : > { %1118 = shalt.err (!%p1115_p8)
}
  0x49   : > { %s1194_s24 = smov 128   ;;  %s1195_s26 = smov 8  }
  0x4a   : > { %969 = dma.hbm_to_vmem [thread:$0]  (!%p1322_p11), %s1318_s25, 256, %s1320_s27, %s1326_s29, %s1194_s24, %s1194_s24, %s1195_s26  }
  0x4b   : > { %p1464_p0 = scmp.ne.s32.totalorder %s1459_s20, 0 }
  0x4c   : > { %s1350_s30 = sand.u32 (!%p1464_p0), 1, %s1179_s13   ;;  %p1465_p4 = scmp.ne.s32.totalorder (!%p1464_p0), %s1457_s18, 0 }
  0x4d   : > { %179 = sbr.rel (%p1464_p0) target bundleno = 787 (0x313), region = 32  ;;  %s881_s4 = sshll.u32 (!%p1464_p0), %s1350_s30, 4 }
  0x4e   : > { %s182_s5 = scalar_lea.sflag (!%p1464_p0), [#allocation3], %s1350_s30  ;;  %s1354_s6 = scalar_lea.vmem (!%p1464_p0), [#allocation2], %s881_s4 }
  0x52   : > { %1162 = dma.done.wait (%p1465_p4), %s182_s5, 256  }
  0x53   : > { %1164 = vsyncadd (%p1465_p4), %s182_s5, 4294967040  ;;  %p1466_p8 = scmp.eq.s32.totalorder %s1244_s16, 0 }
  0x55   : > { %1166 = dma.done.wait (%p1466_p8), [#allocation6], 14464   ;;  %p1467_p3 = pmov %p1466_p8 }
  0x56   : > { %v1196_v0 = vmov 0.0   ;;  %v326_v1 = vld [vmem:[#allocation5 + $0x350] sm:$0xff]  ;;  %v325_v2 = vld [vmem:[#allocation5 + $0x348] sm:$0xff]  ;;  %v319_v3 = vld [vmem:[#allocation5 + $0x318] sm:$0xff]  ;;  %vm638_vm0 = vcmask 23552   ;;  %s884_s18 = sshll.u32 %s1350_s30, 5 }
  0x57   : > { %1168 = vsyncadd (%p1467_p3), [#allocation6], 4294952832  ;;  %396 = vmatprep.mubr.f32.mxu0 %v1196_v0  ;;  %473 = vmatprep.mubr.f32.mxu1 %v1196_v0  ;;  %v318_v4 = vld [vmem:[#allocation5 + $0x310] sm:$0xff]  ;;  %v312_v5 = vld [vmem:[#allocation5 + $0x2e0] sm:$0xff]  ;;  %s215_s20 = scalar_lea.vmem [#allocation8], %s884_s18  ;;  %s893_s27 = sshll.u32 %s1244_s16, 9 }
  0x58   : > { %332 = vmatprep.subr.mxu0 %v326_v1  ;;  %v311_v6 = vld [vmem:[#allocation5 + $0x2d8] sm:$0xff]  ;;  %v305_v7 = vld [vmem:[#allocation5 + $0x2a8] sm:$0xff]  ;;  %v304_v8 = vld [vmem:[#allocation5 + $0x2a0] sm:$0xff]  ;;  %s780_s25 = sshll.u32 %s215_s20, 4  ;;  %s1406_s8 = scalar_lea.hbm %s1452_s3, %s893_s27  ;;  %s1401_s25 = int_to_ptr.vmem [resolvable:$true] %s780_s25 }
  0x59   : > { %333 = vmatpush1.msra.mxu0 %v325_v2  ;;  %v298_v9 = vld [vmem:[#allocation5 + $0x270] sm:$0xff]  ;;  %v297_v10 = vld [vmem:[#allocation5 + $0x268] sm:$0xff]  ;;  %v291_v11 = vld [vmem:[#allocation5 + $0x238] sm:$0xff]  ;;  %s766_s16 = scalar_lea.sflag [#allocation4], %s1350_s30  ;;  %s1119_s9 = scalar_lea.vmem %s1401_s25, 512 }
  0x5a   : > { %334 = vmatprep.subr.mxu0 %v319_v3  ;;  %v290_v12 = vld [vmem:[#allocation5 + $0x230] sm:$0xff]  ;;  %v284_v13 = vld [vmem:[#allocation5 + $0x200] sm:$0xff]  ;;  %v283_v14 = vld [vmem:[#allocation5 + $0x1f8] sm:$0xff]  ;;  %p1120_p11 = scmp.ne.s32.totalorder %s1401_s25, %s1119_s9  ;;  %p1468_p10 = scmp.ne.s32.totalorder %s1462_s10, 0 }
  0x5b   : > { %335 = vmatpush1.msra.mxu0 %v318_v4  ;;  %v277_v15 = vld [vmem:[#allocation5 + $0x1c8] sm:$0xff]  ;;  %v276_v16 = vld [vmem:[#allocation5 + $0x1c0] sm:$0xff]  ;;  %v270_v17 = vld [vmem:[#allocation5 + $0x190] sm:$0xff]  ;;  %s1200_s17 = smov [#allocation8]  }
  0x5c   : > { %336 = vmatprep.subr.mxu0 %v312_v5  ;;  %v269_v18 = vld [vmem:[#allocation5 + $0x188] sm:$0xff]  ;;  %v263_v19 = vld [vmem:[#allocation5 + $0x158] sm:$0xff]  ;;  %v262_v20 = vld [vmem:[#allocation5 + $0x150] sm:$0xff]  ;;  %p1121_p1 = pnand %p1120_p11, %p1468_p10  ;;  %s1123_s21 = sshll.u32 %s1200_s17, 4  ;;  %s1124_s21 = int_to_ptr.vmem [resolvable:$false] %s1123_s21 }
  0x5d   : > { %337 = vmatpush1.msra.mxu0 %v311_v6  ;;  %v256_v21 = vld [vmem:[#allocation5 + $0x120] sm:$0xff]  ;;  %v255_v22 = vld [vmem:[#allocation5 + $0x118] sm:$0xff]  ;;  %v249_v23 = vld [vmem:[#allocation5 + $0xe8] sm:$0xff]  ;;  %s1125_s22 = scalar_lea.vmem %s1124_s21, 1024  ;;  %p1126_p6 = scmp.lt.s32.totalorder %s1401_s25, %s1124_s21 }
  0x5e   : > { %338 = vmatprep.subr.mxu0 %v305_v7  ;;  %v248_v24 = vld [vmem:[#allocation5 + $0xe0] sm:$0xff]  ;;  %v242_v25 = vld [vmem:[#allocation5 + $0xb0] sm:$0xff]  ;;  %v241_v26 = vld [vmem:[#allocation5 + $0xa8] sm:$0xff]  ;;  %p1122_p2 = pneg %p1121_p1  ;;  %p1127_p12 = scmp.lt.s32.totalorder %s1125_s22, %s1119_s9 }
  0x5f   : > { %339 = vmatpush1.msra.mxu0 %v304_v8  ;;  %v235_v27 = vld [vmem:[#allocation5 + $0x78] sm:$0xff]  ;;  %v234_v28 = vld [vmem:[#allocation5 + $0x70] sm:$0xff]  ;;  %v228_v29 = vld [vmem:[#allocation5 + $0x40] sm:$0xff] }
  0x60   : > { %340 = vmatprep.subr.mxu0 %v298_v9  ;;  %v227_v30 = vld [vmem:[#allocation5 + $0x38] sm:$0xff]  ;;  %v221_v31 = vld [vmem:[#allocation5 + $0x8] sm:$0xff]  ;;  %v220_v32 = vld [vmem:[#allocation5] sm:$0xff]  ;;  %p1128_p7 = por %p1127_p12, %p1126_p6 }
  0x61   : > { %341 = vmatpush1.msra.mxu0 %v297_v10  ;;  %v1367_v33 = vld [vmem:[%s1354_s6] sm:$0xff]  ;;  %v1372_v34 = vld [vmem:[%s1354_s6 + $0x8] sm:$0xff] }
  0x62   : > { %342 = vmatprep.subr.mxu0 %v291_v11  ;;  %v328_v40 = vld [vmem:[#allocation5 + $0x360] sm:$0xff]  ;;  %v327_v41 = vld [vmem:[#allocation5 + $0x358] sm:$0xff]  ;;  %v321_v42 = vld [vmem:[#allocation5 + $0x328] sm:$0xff]  ;;  %p1129_p9 = pnand %p1128_p7, %p1122_p2 }
  0x63   : > { %343 = vmatpush1.msra.mxu0 %v290_v12  ;;  %409 = vmatprep.subr.mxu1 %v328_v40  ;;  %v320_v43 = vld [vmem:[#allocation5 + $0x320] sm:$0xff]  ;;  %v314_v44 = vld [vmem:[#allocation5 + $0x2f0] sm:$0xff]  ;;  %v313_v45 = vld [vmem:[#allocation5 + $0x2e8] sm:$0xff] }
  0x64   : > { %344 = vmatprep.subr.mxu0 %v284_v13  ;;  %410 = vmatpush1.msra.mxu1 %v327_v41  ;;  %v307_v46 = vld [vmem:[#allocation5 + $0x2b8] sm:$0xff]  ;;  %v306_v47 = vld [vmem:[#allocation5 + $0x2b0] sm:$0xff]  ;;  %v300_v48 = vld [vmem:[#allocation5 + $0x280] sm:$0xff] }
  0x65   : > { %345 = vmatpush1.msra.mxu0 %v283_v14  ;;  %411 = vmatprep.subr.mxu1 %v321_v42  ;;  %v299_v49 = vld [vmem:[#allocation5 + $0x278] sm:$0xff]  ;;  %v293_v50 = vld [vmem:[#allocation5 + $0x248] sm:$0xff]  ;;  %v292_v51 = vld [vmem:[#allocation5 + $0x240] sm:$0xff] }
  0x66   : > { %346 = vmatprep.subr.mxu0 %v277_v15  ;;  %412 = vmatpush1.msra.mxu1 %v320_v43  ;;  %v286_v52 = vld [vmem:[#allocation5 + $0x210] sm:$0xff]  ;;  %v329_v54 = vld [vmem:[#allocation5 + $0x368] sm:$0xff]  ;;  %v323_v56 = vld [vmem:[#allocation5 + $0x338] sm:$0xff] }
  0x67   : > { %347 = vmatpush1.msra.mxu0 %v276_v16  ;;  %413 = vmatprep.subr.mxu1 %v314_v44  ;;  %v330_v53 = vld [vmem:[#allocation5 + $0x370] sm:$0xff]  ;;  %v285_v55 = vld [vmem:[#allocation5 + $0x208] sm:$0xff]  ;;  %v279_v58 = vld [vmem:[#allocation5 + $0x1d8] sm:$0xff] }
  0x68   : > { %348 = vmatprep.subr.mxu0 %v270_v17  ;;  %414 = vmatpush1.msra.mxu1 %v313_v45  ;;  %v322_v57 = vld [vmem:[#allocation5 + $0x330] sm:$0xff]  ;;  %v316_v59 = vld [vmem:[#allocation5 + $0x300] sm:$0xff]  ;;  %v315_v61 = vld [vmem:[#allocation5 + $0x2f8] sm:$0xff] }
  0x69   : > { %349 = vmatpush1.msra.mxu0 %v269_v18  ;;  %415 = vmatprep.subr.mxu1 %v307_v46  ;;  %v278_v60 = vld [vmem:[#allocation5 + $0x1d0] sm:$0xff]  ;;  %v272_v62 = vld [vmem:[#allocation5 + $0x1a0] sm:$0xff]  ;;  %v309_v63 = vld [vmem:[#allocation5 + $0x2c8] sm:$0xff] }
  0x6a   : > { %350 = vmatprep.subr.mxu0 %v263_v19  ;;  %416 = vmatpush1.msra.mxu1 %v306_v47  ;;  %v271_v1 = vld [vmem:[#allocation5 + $0x198] sm:$0xff]  ;;  %v308_v2 = vld [vmem:[#allocation5 + $0x2c0] sm:$0xff]  ;;  %v265_v3 = vld [vmem:[#allocation5 + $0x168] sm:$0xff] }
  0x6b   : > { %351 = vmatpush1.msra.mxu0 %v262_v20  ;;  %417 = vmatprep.subr.mxu1 %v300_v48  ;;  %v302_v4 = vld [vmem:[#allocation5 + $0x290] sm:$0xff]  ;;  %v264_v5 = vld [vmem:[#allocation5 + $0x160] sm:$0xff]  ;;  %v301_v6 = vld [vmem:[#allocation5 + $0x288] sm:$0xff] }
  0x6c   : > { %352 = vmatprep.subr.mxu0 %v256_v21  ;;  %418 = vmatpush1.msra.mxu1 %v299_v49  ;;  %v258_v7 = vld [vmem:[#allocation5 + $0x130] sm:$0xff]  ;;  %v295_v8 = vld [vmem:[#allocation5 + $0x258] sm:$0xff]  ;;  %v257_v9 = vld [vmem:[#allocation5 + $0x128] sm:$0xff] }
  0x6d   : > { %353 = vmatpush1.msra.mxu0 %v255_v22  ;;  %419 = vmatprep.subr.mxu1 %v293_v50  ;;  %v294_v10 = vld [vmem:[#allocation5 + $0x250] sm:$0xff]  ;;  %v251_v11 = vld [vmem:[#allocation5 + $0xf8] sm:$0xff]  ;;  %v288_v12 = vld [vmem:[#allocation5 + $0x220] sm:$0xff] }
  0x6e   : > { %354 = vmatprep.subr.mxu0 %v249_v23  ;;  %420 = vmatpush1.msra.mxu1 %v292_v51  ;;  %v250_v13 = vld [vmem:[#allocation5 + $0xf0] sm:$0xff]  ;;  %v287_v14 = vld [vmem:[#allocation5 + $0x218] sm:$0xff]  ;;  %v244_v15 = vld [vmem:[#allocation5 + $0xc0] sm:$0xff] }
  0x6f   : > { %355 = vmatpush1.msra.mxu0 %v248_v24  ;;  %421 = vmatprep.subr.mxu1 %v286_v52  ;;  %v281_v16 = vld [vmem:[#allocation5 + $0x1e8] sm:$0xff]  ;;  %v243_v17 = vld [vmem:[#allocation5 + $0xb8] sm:$0xff]  ;;  %v280_v18 = vld [vmem:[#allocation5 + $0x1e0] sm:$0xff] }
  0x70   : > { %356 = vmatprep.subr.mxu0 %v242_v25  ;;  %422 = vmatpush1.msra.mxu1 %v285_v55  ;;  %v237_v19 = vld [vmem:[#allocation5 + $0x88] sm:$0xff]  ;;  %v274_v20 = vld [vmem:[#allocation5 + $0x1b0] sm:$0xff]  ;;  %v236_v21 = vld [vmem:[#allocation5 + $0x80] sm:$0xff] }
  0x71   : > { %357 = vmatpush1.msra.mxu0 %v241_v26  ;;  %423 = vmatprep.subr.mxu1 %v279_v58  ;;  %v273_v22 = vld [vmem:[#allocation5 + $0x1a8] sm:$0xff]  ;;  %v230_v23 = vld [vmem:[#allocation5 + $0x50] sm:$0xff]  ;;  %v267_v24 = vld [vmem:[#allocation5 + $0x178] sm:$0xff] }
  0x72   : > { %358 = vmatprep.subr.mxu0 %v235_v27  ;;  %424 = vmatpush1.msra.mxu1 %v278_v60  ;;  %v229_v25 = vld [vmem:[#allocation5 + $0x48] sm:$0xff]  ;;  %v266_v26 = vld [vmem:[#allocation5 + $0x170] sm:$0xff]  ;;  %v223_v27 = vld [vmem:[#allocation5 + $0x18] sm:$0xff] }
  0x73   : > { %359 = vmatpush1.msra.mxu0 %v234_v28  ;;  %425 = vmatprep.subr.mxu1 %v272_v62  ;;  %v260_v28 = vld [vmem:[#allocation5 + $0x140] sm:$0xff]  ;;  %v246_v40 = vld [vmem:[#allocation5 + $0xd0] sm:$0xff]  ;;  %v317_v41 = vld [vmem:[#allocation5 + $0x308] sm:$0xff] }
  0x74   : > { %360 = vmatprep.subr.mxu0 %v228_v29  ;;  %426 = vmatpush1.msra.mxu1 %v271_v1  ;;  %v222_v29 = vld [vmem:[#allocation5 + $0x10] sm:$0xff]  ;;  %v245_v42 = vld [vmem:[#allocation5 + $0xc8] sm:$0xff]  ;;  %v239_v43 = vld [vmem:[#allocation5 + $0x98] sm:$0xff] }
  0x75   : > { %361 = vmatpush1.msra.mxu0 %v227_v30  ;;  %427 = vmatprep.subr.mxu1 %v265_v3  ;;  %v259_v30 = vld [vmem:[#allocation5 + $0x138] sm:$0xff]  ;;  %v310_v44 = vld [vmem:[#allocation5 + $0x2d0] sm:$0xff]  ;;  %v232_v46 = vld [vmem:[#allocation5 + $0x60] sm:$0xff] }
  0x76   : > { %362 = vmatprep.subr.mxu0 %v221_v31  ;;  %428 = vmatpush1.msra.mxu1 %v264_v5  ;;  %v331_v31 = vld [vmem:[#allocation5 + $0x378] sm:$0xff]  ;;  %v238_v45 = vld [vmem:[#allocation5 + $0x90] sm:$0xff]  ;;  %v296_v49 = vld [vmem:[#allocation5 + $0x260] sm:$0xff] }
  0x77   : > { %363 = vmatpush1.msra.mxu0 %v220_v32  ;;  %429 = vmatprep.subr.mxu1 %v258_v7  ;;  %v253_v32 = vld [vmem:[#allocation5 + $0x108] sm:$0xff]  ;;  %v303_v47 = vld [vmem:[#allocation5 + $0x298] sm:$0xff]  ;;  %v224_v51 = vld [vmem:[#allocation5 + $0x20] sm:$0xff]  ;;  %v1197_v7 = vmov 1  }
  0x78   : > { %397 = vmatmul.mubr.f32.vlgmr.msra.gmra.mxu0 %v1367_v33  ;;  %486 = vmatprep.subr.mxu0 %v330_v53  ;;  %v231_v48 = vld [vmem:[#allocation5 + $0x58] sm:$0xff]  ;;  %v225_v50 = vld [vmem:[#allocation5 + $0x28] sm:$0xff]  ;;  %v282_v53 = vld [vmem:[#allocation5 + $0x1f0] sm:$0xff] }
  0x79   : > { %402 = vmatprep.mubr.f32.mxu0 %v1196_v0  ;;  %487 = vmatpush1.msra.mxu0 %v329_v54  ;;  %v289_v52 = vld [vmem:[#allocation5 + $0x228] sm:$0xff]  ;;  %v275_v54 = vld [vmem:[#allocation5 + $0x1b8] sm:$0xff]  ;;  %v268_v55 = vld [vmem:[#allocation5 + $0x180] sm:$0xff] }
  0x7a   : > { %488 = vmatprep.subr.mxu0 %v323_v56  ;;  %430 = vmatpush1.msra.mxu1 %v257_v9  ;;  %v261_v56 = vld [vmem:[#allocation5 + $0x148] sm:$0xff]  ;;  %v247_v58 = vld [vmem:[#allocation5 + $0xd8] sm:$0xff] }
  0x7b   : > { %489 = vmatpush1.msra.mxu0 %v322_v57  ;;  %431 = vmatprep.subr.mxu1 %v251_v11  ;;  %v254_v57 = vld [vmem:[#allocation5 + $0x110] sm:$0xff] }
  0x7c   : > { %403 = vmatmul.mubr.f32.gmra.mxu0 %v1372_v34  ;;  %490 = vmatprep.subr.mxu0 %v316_v59  ;;  %v240_v59 = vld [vmem:[#allocation5 + $0xa0] sm:$0xff] }
  0x7d   : > { %550 = vmatprep.mubr.f32.mxu0 %v1196_v0  ;;  %491 = vmatpush1.msra.mxu0 %v315_v61 }
  0x7e   : > { %492 = vmatprep.subr.mxu0 %v309_v63  ;;  %432 = vmatpush1.msra.mxu1 %v250_v13 }
  0x7f   : > { %493 = vmatpush1.msra.mxu0 %v308_v2  ;;  %433 = vmatprep.subr.mxu1 %v244_v15 }
  0x80   : > { %494 = vmatprep.subr.mxu0 %v302_v4  ;;  %434 = vmatpush1.msra.mxu1 %v243_v17 }
  0x81   : > { %495 = vmatpush1.msra.mxu0 %v301_v6  ;;  %435 = vmatprep.subr.mxu1 %v237_v19 }
  0x82   : > { %496 = vmatprep.subr.mxu0 %v295_v8  ;;  %436 = vmatpush1.msra.mxu1 %v236_v21  ;;  %v661_v21 = vld [vmem:[#allocation7] ss:$4 sm:$0x3] }
  0x83   : > { %497 = vmatpush1.msra.mxu0 %v294_v10  ;;  %437 = vmatprep.subr.mxu1 %v230_v23  ;;  %v1199_v10 = vmov 2   ;;  %v696_v23 = vld [vmem:[#allocation7 + $0x1] ss:$4 sm:$0x3] }
  0x84   : > { %498 = vmatprep.subr.mxu0 %v288_v12  ;;  %438 = vmatpush1.msra.mxu1 %v229_v25 }
  0x85   : > { %499 = vmatpush1.msra.mxu0 %v287_v14  ;;  %439 = vmatprep.subr.mxu1 %v223_v27  ;;  %v663_v14 = vlaneseq }
  0x86   : > { %500 = vmatprep.subr.mxu0 %v281_v16  ;;  %440 = vmatpush1.msra.mxu1 %v222_v29 }
  0x87   : > { %501 = vmatpush1.msra.mxu0 %v280_v18  ;;  %912 = vmatprep.subr.mxu1 %v331_v31  ;;  %v664_v17 = vshrl.u32 %v663_v14, 7 }
  0x88   : > { %502 = vmatprep.subr.mxu0 %v274_v20  ;;  %474 = vmatmul.mubr.f32.vlgmr.msra.gmra.mxu1 %v1367_v33 }
  0x89   : > { %503 = vmatpush1.msra.mxu0 %v273_v22  ;;  %913 = vmatpush3.msra.mxu1 %v331_v31  ;;  %v665_v19 = vsub.s32 0, %v664_v17  ;;  %v669_v20 = vsub.s32 1, %v664_v17 }
  0x8a   : > { %504 = vmatprep.subr.mxu0 %v267_v24  ;;  %479 = vmatprep.mubr.f32.mxu1 %v1196_v0 }
  0x8b   : > { %505 = vmatpush1.msra.mxu0 %v266_v26  ;;  %1025 = vset.pattern.permute.xlu1 %v1197_v7  ;;  %v705_v24 = vrot.slane %v696_v23, %v669_v20  ;;  %v729_v26 = vld [vmem:[#allocation7 + $0x2] ss:$4 sm:$0x3]  ;;  %v670_v29 = vrot.slane %v661_v21, %v669_v20 }
  0x8c   : > { %506 = vmatprep.subr.mxu0 %v260_v28  ;;  %480 = vmatmul.mubr.f32.gmra.mxu1 %v1372_v34  ;;  %v666_v28 = vrot.slane %v661_v21, %v665_v19  ;;  %v738_v31 = vrot.slane %v729_v26, %v669_v20 }
  0x8d   : > { %507 = vmatpush1.msra.mxu0 %v259_v30  ;;  %944 = vmatprep.mubr.f32.mxu1 %v1367_v33  ;;  %v701_v30 = vrot.slane %v696_v23, %v665_v19 }
  0x8e   : > { %508 = vmatprep.subr.mxu0 %v253_v32  ;;  %v734_v32 = vrot.slane %v729_v26, %v665_v19 }
 0x138   : > { %v1376_v35 = vpop.f32.mrf.mxu0 }
 0x139   : > { %v639_v36 = vsel %vm638_vm0, %v1376_v35, -inf }
 0x13a   : > { %640 = vmax.xlane.f32.xlu0 %v639_v36  ;;  %v1380_v37 = vpop.f32.mrf.mxu0  ;;  %v324_v36 = vld [vmem:[#allocation5 + $0x340] sm:$0xff] }
 0x13b   : > { %914 = vmatprep.subr.mxu1 %v324_v36 }
 0x13c   : > { %v1382_v38 = vpop.f32.mrf.mxu0  ;;  %915 = vmatpush3.msra.mxu1 %v324_v36 }
 0x13d   : > { %v642_v39 = vsel %vm638_vm0, %v1382_v38, -inf  ;;  %916 = vmatprep.subr.mxu1 %v317_v41 }
 0x13e   : > { %643 = vmax.xlane.f32.xlu0 %v642_v39  ;;  %v252_v39 = vld [vmem:[#allocation5 + $0x100] sm:$0xff]  ;;  %917 = vmatpush3.msra.mxu1 %v317_v41  ;;  %v406_v22 = vpop.f32.mrf.mxu0  ;;  %v673_v41 = vsub.f32 %v1380_v37, %v666_v28 }
 0x13f   : > { %509 = vmatpush1.msra.mxu0 %v252_v39  ;;  %918 = vmatprep.subr.mxu1 %v310_v44 }
 0x140   : > { %510 = vmatprep.subr.mxu0 %v246_v40  ;;  %919 = vmatpush3.msra.mxu1 %v310_v44 }
 0x141   : > { %511 = vmatpush1.msra.mxu0 %v245_v42  ;;  %920 = vmatprep.subr.mxu1 %v303_v47 }
 0x142   : > { %512 = vmatprep.subr.mxu0 %v239_v43  ;;  %921 = vmatpush3.msra.mxu1 %v303_v47 }
 0x143   : > { %513 = vmatpush1.msra.mxu0 %v238_v45  ;;  %922 = vmatprep.subr.mxu1 %v296_v49 }
 0x144   : > { %514 = vmatprep.subr.mxu0 %v232_v46  ;;  %923 = vmatpush3.msra.mxu1 %v296_v49 }
 0x145   : > { %515 = vmatpush1.msra.mxu0 %v231_v48  ;;  %924 = vmatprep.subr.mxu1 %v289_v52 }
 0x146   : > { %516 = vmatprep.subr.mxu0 %v225_v50  ;;  %925 = vmatpush3.msra.mxu1 %v289_v52 }
 0x147   : > { %517 = vmatpush1.msra.mxu0 %v224_v51  ;;  %926 = vmatprep.subr.mxu1 %v282_v53 }
 0x148   : > { %551 = vmatmul.mubr.f32.vlgmr.msra.gmra.mxu0 %v1367_v33  ;;  %927 = vmatpush3.msra.mxu1 %v282_v53  ;;  %v233_v33 = vld [vmem:[#allocation5 + $0x68] sm:$0xff]  ;;  %v475_v13 = vpop.f32.mrf.mxu1 }
 0x149   : > { %556 = vmatprep.mubr.f32.mxu0 %v1196_v0  ;;  %928 = vmatprep.subr.mxu1 %v275_v54  ;;  %v226_v0 = vld [vmem:[#allocation5 + $0x30] sm:$0xff]  ;;  %v674_v42 = vsub.f32 %v475_v13, %v670_v29 }
 0x14a   : > { %929 = vmatpush3.msra.mxu1 %v275_v54  ;;  %v477_v15 = vpop.f32.mrf.mxu1 }
 0x14b   : > { %930 = vmatprep.subr.mxu1 %v268_v55  ;;  %v708_v43 = vsub.f32 %v477_v15, %v701_v30 }
 0x14c   : > { %557 = vmatmul.mubr.f32.gmra.mxu0 %v1372_v34  ;;  %931 = vmatpush3.msra.mxu1 %v268_v55  ;;  %v481_v16 = vpop.f32.mrf.mxu1 }
 0x14d   : > { %932 = vmatprep.subr.mxu1 %v261_v56 }
 0x14e   : > { %933 = vmatpush3.msra.mxu1 %v261_v56  ;;  %v483_v18 = vpop.f32.mrf.mxu1 }
 0x14f   : > { %934 = vmatprep.subr.mxu1 %v254_v57 }
 0x150   : > { %935 = vmatpush3.msra.mxu1 %v254_v57 }
 0x151   : > { %936 = vmatprep.subr.mxu1 %v247_v58 }
 0x152   : > { %937 = vmatpush3.msra.mxu1 %v247_v58 }
 0x153   : > { %938 = vmatprep.subr.mxu1 %v240_v59 }
 0x154   : > { %939 = vmatpush3.msra.mxu1 %v240_v59 }
 0x155   : > { %940 = vmatprep.subr.mxu1 %v233_v33 }
 0x156   : > { %941 = vmatpush3.msra.mxu1 %v233_v33  ;;  %v710_v33 = vsub.f32 %v483_v18, %v701_v30 }
 0x157   : > { %942 = vmatprep.subr.mxu1 %v226_v0 }
 0x158   : > { %943 = vmatpush3.msra.mxu1 %v226_v0 }
 0x159   : > { %945 = vmatmul.mubr.f32.vlgmr.msra.gmra.mxu1 %v1372_v34  ;;  %v1198_v34 = vmov 0  }
 0x15a   : > { %1024 = vset.pattern.permute.xlu0 %v1198_v34 }
 0x1c3   : > { %v641_v60 = vpop.xlane.xlu0 %640 }
 0x1c4   : > { %v645_v61 = vsub.f32 %v1376_v35, %v641_v60  ;;  %v676_v60 = vsub.f32 %v481_v16, %v670_v29 }
 0x1c6   : > { %v647_v62 = vmul.f32 1.442695, %v645_v61 }
 0x1c7   : > { %v644_v63 = vpop.xlane.xlu0 %643 }
 0x1c8   : > { %1031 = vpow2.f32 %v647_v62  ;;  %v646_v1 = vsub.f32 %v1382_v38, %v644_v63  ;;  %v675_v63 = vsub.f32 %v406_v22, %v666_v28 }
 0x1ca   : > { %v649_v2 = vmul.f32 1.442695, %v646_v1 }
 0x1cc   : > { %1033 = vpow2.f32 %v649_v2 }
 0x1d5   : > { %v1032_v3 = vpop.eup %1031 }
 0x1d6   : > { %v651_v4 = vsel %vm638_vm0, %v1032_v3, 0.0 }
 0x1d7   : > { %652 = vadd.xlane.f32.xlu1 %v651_v4 }
 0x1d9   : > { %v1034_v5 = vpop.eup %1033 }
 0x1da   : > { %v654_v6 = vsel %vm638_vm0, %v1034_v5, 0.0 }
 0x1db   : > { %655 = vadd.xlane.f32.xlu1 %v654_v6 }
 0x208   : > { %v552_v27 = vpop.f32.mrf.mxu0 }
 0x209   : > { %v709_v36 = vsub.f32 %v552_v27, %v705_v24 }
 0x20a   : > { %v554_v39 = vpop.f32.mrf.mxu0 }
 0x20b   : > { %v741_v46 = vsub.f32 %v554_v39, %v734_v32 }
 0x20c   : > { %v558_v59 = vpop.f32.mrf.mxu0 }
 0x20d   : > { %v711_v0 = vsub.f32 %v558_v59, %v705_v24 }
 0x20e   : > { %v560_v62 = vpop.f32.mrf.mxu0 }
 0x20f   : > { %v743_v6 = vsub.f32 %v560_v62, %v734_v32 }
 0x219   : > { %v946_v25 = vpop.f32.mrf.mxu1 }
 0x21b   : > { %v629_v40 = vpop.f32.mrf.mxu1 }
 0x21c   : > { %v742_v47 = vsub.f32 %v629_v40, %v738_v31 }
 0x260   : > { %v653_v35 = vpop.xlane.xlu1 %652 }
 0x261   : > { %1035 = vrcp.f32 %v653_v35 }
 0x264   : > { %v656_v8 = vpop.xlane.xlu1 %655 }
 0x265   : > { %1037 = vrcp.f32 %v656_v8 }
 0x26e   : > { %v1036_v9 = vpop.eup %1035 }
 0x26f   : > { %v658_v38 = vmul.f32 %v1036_v9, %v1032_v3  ;;  %v744_v3 = vsub.f32 %v946_v25, %v738_v31 }
 0x271   : > { %679 = vperm.xlu0 %1024, %v658_v38   ;;  %713 = vperm.xlu1 %1025, %v658_v38  }
 0x272   : > { %v1038_v11 = vpop.eup %1037 }
 0x273   : > { %v660_v12 = vmul.f32 %v1038_v11, %v1034_v5 }
 0x275   : > { %1026 = vset.pattern.permute.xlu1 %v1199_v10  ;;  %1030 = vset.pattern.permute.xlu0 %v1199_v10 }
 0x276   : > { %746 = vperm.xlu1 %1026, %v658_v38  }
 0x27a   : > { %1027 = vset.pattern.permute.xlu1 %v1198_v34 }
 0x27b   : > { %684 = vperm.xlu1 %1027, %v660_v12  }
 0x27f   : > { %1028 = vset.pattern.permute.xlu1 %v1197_v7 }
 0x280   : > { %717 = vperm.xlu1 %1028, %v660_v12  }
 0x284   : > { %1029 = vset.pattern.permute.xlu1 %v1199_v10 }
 0x285   : > { %750 = vperm.xlu1 %1029, %v660_v12  }
 0x2ec   : > { %v714_v44 = vpop.permute.xlu1 %713  ;;  %v680_v45 = vpop.permute.xlu0 %679 }
 0x2ed   : > { %v720_v48 = vmul.f32 %v714_v44, %v708_v43  ;;  %v721_v49 = vmul.f32 %v714_v44, %v709_v36  ;;  %v687_v50 = vmul.f32 %v680_v45, %v673_v41  ;;  %v688_v51 = vmul.f32 %v680_v45, %v674_v42 }
 0x2ef   : > { %v724_v53 = vadd.f32 %v720_v48, %v687_v50  ;;  %v725_v54 = vadd.f32 %v721_v49, %v688_v51 }
 0x2f1   : > { %v747_v52 = vpop.permute.xlu1 %746 }
 0x2f2   : > { %v753_v55 = vmul.f32 %v747_v52, %v741_v46  ;;  %v754_v56 = vmul.f32 %v747_v52, %v742_v47 }
 0x2f4   : > { %v757_v57 = vadd.f32 %v753_v55, %v724_v53  ;;  %v758_v58 = vadd.f32 %v754_v56, %v725_v54 }
 0x2f6   : > { %761 = vst [vmem:[%s215_s20] sm:$0xff] %v757_v57  ;;  %762 = vst [vmem:[%s215_s20 + $0x8] sm:$0xff] %v758_v58  ;;  %v685_v37 = vpop.permute.xlu1 %684 }
 0x2f7   : > { %v689_v4 = vmul.f32 %v685_v37, %v675_v63  ;;  %v690_v5 = vmul.f32 %v685_v37, %v676_v60 }
 0x2fb   : > { %v718_v61 = vpop.permute.xlu1 %717 }
 0x2fc   : > { %v722_v1 = vmul.f32 %v718_v61, %v710_v33  ;;  %v723_v2 = vmul.f32 %v718_v61, %v711_v0 }
 0x2fe   : > { %v726_v34 = vadd.f32 %v722_v1, %v689_v4  ;;  %v727_v35 = vadd.f32 %v723_v2, %v690_v5 }
 0x300   : > { %v751_v7 = vpop.permute.xlu1 %750 }
 0x301   : > { %v755_v8 = vmul.f32 %v751_v7, %v743_v6  ;;  %v756_v9 = vmul.f32 %v751_v7, %v744_v3 }
 0x303   : > { %v759_v38 = vadd.f32 %v755_v8, %v726_v34  ;;  %v760_v10 = vadd.f32 %v756_v9, %v727_v35 }
 0x305   : > { %763 = vst [vmem:[%s215_s20 + $0x10] sm:$0xff] %v759_v38  ;;  %764 = vst [vmem:[%s215_s20 + $0x18] sm:$0xff] %v760_v10 }
 0x306   : > { %1132 = shalt.err (!%p1129_p9)
}
 0x307   : > { %s1133_s23 = scalar_lea.hbm %s1406_s8, 512  ;;  %s1137_s4 = scalar_lea.hbm %s1452_s3, 1024 }
 0x308   : > { %p1134_p13 = scmp.ne.s32.totalorder %s1406_s8, %s1133_s23  ;;  %p1138_p4 = scmp.lt.s32.totalorder %s1406_s8, %s1452_s3 }
 0x309   : > { %p1139_p8 = scmp.lt.s32.totalorder %s1137_s4, %s1133_s23 }
 0x30a   : > { %p1135_p5 = pnand %p1134_p13, %p1468_p10 }
 0x30b   : > { %p1140_p3 = por %p1139_p8, %p1138_p4 }
 0x30c   : > { %p1136_p0 = pneg %p1135_p5 }
 0x30e   : > { %p1141_p11 = pnand %p1140_p3, %p1136_p0 }
 0x310   : > { %1144 = shalt.err (!%p1141_p11)
}
 0x311   : > { %s1201_s18 = smov 256   ;;  %s1202_s20 = smov 16  }
 0x312   : > { %957 = dma.vmem_to_hbm [thread:$0]  (%p1468_p10), %s1401_s25, 512, %s1406_s8, %s766_s16, %s1201_s18, %s1201_s18, %s1202_s20  }
 0x313 PF: > { %s795_s27 = sand.u32 1, %s1175_s12   ;;  %p1469_p1 = scmp.ne.s32.totalorder %s1458_s19, 0 }
 0x314   : > { %p1470_p2 = scmp.ge.s32.totalorder %s1187_s15, 2  ;;  %s796_s28 = scalar_lea.sflag [#allocation4], %s795_s27 }
 0x316   : > { %p971_p6 = pnand %p1470_p2, %p1469_p1 }
 0x318   : > { %p972_p12 = pneg %p971_p6 }
 0x31a   : > { %1170 = dma.done.wait (%p972_p12), %s796_s28, 512  }
 0x31b   : > { %1172 = vsyncadd (%p972_p12), %s796_s28, 4294966784  ;;  %p17_p7 = scmp.ge.s32.totalorder %s1295_s7, 4   ;;  %s1471_s12 = smov %s1179_s13 }
 0x31c   : > { %s1472_s13 = smov %s1183_s14  ;;  %s1473_s14 = smov %s1311_s11 }
 0x31d   : > { %s1474_s15 = smov %s1295_s7  ;;  %19 = sbr.rel (!%p17_p7) target bundleno = 6 (0x6), region = 87 }
 0x322   :  { %801 = vsyncpa [#allocation3], 1 }
 0x323   :  { %803 = vsyncpa [#allocation3 + $0x1], 1 }
 0x324   :  { %804 = vsyncpa [#allocation6], 1 }
 0x325   :  { %805 = vsyncpa [#allocation4], 1 }
 0x326   :  { %807 = vsyncpa [#allocation4 + $0x1], 1 }

// kernel: tpu_custom_call.1
= control target key start
LH: loop header
LB: loop body
LE: loop exit
PB: predicated region body
PF: predicated region fallthrough
CT: control target
= control target key end

     0   :  { %8 = vsyncpa [#allocation3], 0  ;;  %s1449_s0 = inlined_call_operand.hbm [shape: f32[32,128], index: 0, kind: input, shape index: {}]   ;;  %s1450_s1 = inlined_call_operand.hbm [shape: f32[128,896], index: 1, kind: input, shape index: {}]   ;;  %s1451_s2 = inlined_call_operand.hbm [shape: f32[3,256], index: 2, kind: input, shape index: {}]   ;;  %s1452_s3 = inlined_call_operand.hbm [shape: f32[32,256], index: 3, kind: output, shape index: {}]  }
   0x1   :  { %10 = vsyncpa [#allocation3 + $0x1], 0 }
   0x2   :  { %11 = vsyncpa [#allocation6], 0 }
   0x3   :  { %12 = vsyncpa [#allocation4], 0 }
   0x4   :  { %14 = vsyncpa [#allocation4 + $0x1], 0  ;;  %s1223_s12 = smov 0   ;;  %s1225_s13 = smov 0  }
   0x5   :  { %s1227_s14 = smov 0   ;;  %s1229_s15 = smov 0  }
   0x6 LB: > { %s1244_s16 = sadd.s32 4294967295, %s1187_s15   ;;  %s872_s17 = sadd.s32 4294967294, %s1187_s15   ;;  %s1187_s15 = sphi %s1229_s15, %s1474_s15   ;;  %s1183_s14 = sphi %s1227_s14, %s1473_s14   ;;  %s1179_s13 = sphi %s1225_s13, %s1472_s13   ;;  %s1175_s12 = sphi %s1223_s12, %s1471_s12  }
   0x7   : > { %p40_p0 = scmp.ne.s32.totalorder %s1179_s13, %s1175_s12  ;;  %p1453_p1 = scmp.eq.s32.totalorder %s1244_s16, 0 }
   0x8   : > { %p112_p3 = scmp.eq.s32.totalorder %s872_s17, 1  ;;  %p873_p5 = scmp.ge.s32.totalorder %s1187_s15, 1 }
   0x9   : > { %p1253_p4 = por %p1453_p1, %p40_p0  ;;  %p119_p7 = scmp.lt.s32.totalorder %s1187_s15, 3 }
   0xa   : > { %p1258_p6 = por %p112_p3, %p40_p0  ;;  %s1189_s21 = smov [#allocation5]  }
   0xb   : > { %s1457_s18 = scalar_select %p1253_p4, 1, 0 }
   0xc   : > { %s1458_s19 = scalar_select %p1258_p6, 1, 0 }
   0xd   : > { %p1263_p8 = pnand %p873_p5, %p119_p7  ;;  %s131_s22 = sshll.u32 %s1189_s21, 4  ;;  %s132_s22 = int_to_ptr.vmem [resolvable:$true] %s131_s22 }
   0xe   : > { %s1190_s24 = smov [#allocation7]   ;;  %s1050_s26 = scalar_lea.vmem %s132_s22, 14336 }
   0xf   : > { %s1459_s20 = scalar_select %p1263_p8, 1, 0 }
  0x10   : > { %p959_p9 = pneg %p1263_p8  ;;  %s145_s25 = sshll.u32 %s1190_s24, 4  ;;  %s146_s25 = int_to_ptr.vmem [resolvable:$true] %s145_s25 }
  0x11   : > { %p1051_p13 = scmp.ne.s32.totalorder %s132_s22, %s1050_s26  ;;  %p1058_p5 = scmp.lt.s32.totalorder %s132_s22, %s132_s22 }
  0x12   : > { %p1272_p11 = pnand %p959_p9, %p1453_p1  ;;  %p1059_p7 = scmp.lt.s32.totalorder %s1050_s26, %s1050_s26 }
  0x14   : > { %p1041_p12 = pneg %p1272_p11  ;;  %p1060_p10 = por %p1059_p7, %p1058_p5 }
  0x16   : > { %p1053_p0 = pnand %p1051_p13, %p1041_p12 }
  0x18   : > { %p1054_p3 = pneg %p1053_p0 }
  0x1a   : > { %p1061_p9 = pnand %p1060_p10, %p1054_p3 }
  0x1c   : > { %1064 = shalt.err (!%p1061_p9)
}
  0x1d   : > { %s1191_s27 = smov 896   ;;  %s1192_s28 = smov 56  }
  0x1e   : > { %962 = dma.hbm_to_vmem [thread:$0]  (!%p1272_p11), %s1450_s1, 14336, %s132_s22, [#allocation6], %s1191_s27, %s1191_s27, %s1192_s28  }
  0x1f   : > { %s1076_s4 = scalar_lea.vmem %s146_s25, 128  ;;  %p1084_p2 = scmp.lt.s32.totalorder %s146_s25, %s146_s25 }
  0x20   : > { %p1077_p1 = scmp.ne.s32.totalorder %s146_s25, %s1076_s4  ;;  %p1085_p6 = scmp.lt.s32.totalorder %s1076_s4, %s1076_s4 }
  0x22   : > { %p1079_p13 = pnand %p1077_p1, %p1041_p12  ;;  %p1086_p5 = por %p1085_p6, %p1084_p2 }
  0x24   : > { %p1080_p0 = pneg %p1079_p13 }
  0x26   : > { %p1087_p10 = pnand %p1086_p5, %p1080_p0 }
  0x28   : > { %1090 = shalt.err (!%p1087_p10)
}
  0x29   : > { %965 = dma.hbm_to_vmem [thread:$0]  (!%p1272_p11), %s1451_s2, 128, %s146_s25, [#allocation6]  }
  0x2a   : > { %s1295_s7 = sadd.s32 1, %s1187_s15   ;;  %s27_s8 = sadd.s32 1, %s1183_s14 }
  0x2b   : > { %s24_s9 = ssub.s32 %s1187_s15, %s1295_s7  ;;  %p34_p1 = scmp.ne.s32.totalorder %s1183_s14, %s1179_s13 }
  0x2c   : > { %p25_p2 = scmp.eq.s32.totalorder %s24_s9, 0  ;;  %p35_p6 = scmp.eq.s32.totalorder %s1187_s15, 0 }
  0x2d   : > { %p1461_p12 = scmp.eq.s32.totalorder %s1244_s16, 1  ;;  %p976_p7 = scmp.lt.s32.totalorder %s1187_s15, 2 }
  0x2e   : > { %s1311_s11 = scalar_select %p25_p2, %s1183_s14, %s27_s8  }
  0x2f   : > { %p1305_p3 = por %p1461_p12, %p34_p1  ;;  %p36_p9 = por %p35_p6, %p34_p1 }
  0x30   : > { %s156_s17 = sand.u32 1, %s1183_s14   ;;  %s891_s22 = sshll.u32 %s1187_s15, 8 }
  0x31   : > { %s1462_s10 = scalar_select %p1305_p3, 1, 0 }
  0x32   : > { %s877_s21 = sshll.u32 %s156_s17, 4  ;;  %s1318_s25 = scalar_lea.hbm %s1449_s0, %s891_s22 }
  0x33   : > { %s160_s26 = scalar_lea.vmem [#allocation2], %s877_s21  ;;  %p1322_p11 = pnand %p976_p7, %p36_p9 }
  0x34   : > { %s167_s27 = sshll.u32 %s160_s26, 4  ;;  %s1326_s29 = scalar_lea.sflag [#allocation3], %s156_s17  ;;  %s1320_s27 = int_to_ptr.vmem [resolvable:$true] %s167_s27 }
  0x35   : > { %s1091_s30 = scalar_lea.hbm %s1318_s25, 256  ;;  %p1093_p0 = pneg %p1322_p11 }
  0x36   : > { %p1092_p13 = scmp.ne.s32.totalorder %s1318_s25, %s1091_s30  ;;  %s1096_s6 = scalar_lea.hbm %s1449_s0, 512 }
  0x37   : > { %p1097_p1 = scmp.lt.s32.totalorder %s1318_s25, %s1449_s0  ;;  %p1098_p2 = scmp.lt.s32.totalorder %s1096_s6, %s1091_s30 }
  0x38   : > { %p1094_p5 = pnand %p1093_p0, %p1092_p13 }
  0x39   : > { %p1099_p6 = por %p1098_p2, %p1097_p1 }
  0x3a   : > { %p1095_p10 = pneg %p1094_p5 }
  0x3c   : > { %p1100_p12 = pnand %p1099_p6, %p1095_p10 }
  0x3e   : > { %1103 = shalt.err (!%p1100_p12)
}
  0x3f   : > { %s1104_s17 = scalar_lea.vmem %s1320_s27, 256  ;;  %s1193_s21 = smov [#allocation2]  }
  0x40   : > { %p1105_p7 = scmp.ne.s32.totalorder %s1320_s27, %s1104_s17  ;;  %s1109_s22 = sshll.u32 %s1193_s21, 4  ;;  %s1110_s22 = int_to_ptr.vmem [resolvable:$false] %s1109_s22 }
  0x41   : > { %s1111_s23 = scalar_lea.vmem %s1110_s22, 512  ;;  %p1112_p5 = scmp.lt.s32.totalorder %s1320_s27, %s1110_s22 }
  0x42   : > { %p1107_p9 = pnand %p1105_p7, %p1093_p0  ;;  %p1113_p3 = scmp.lt.s32.totalorder %s1111_s23, %s1104_s17 }
  0x44   : > { %p1108_p13 = pneg %p1107_p9  ;;  %p1114_p4 = por %p1113_p3, %p1112_p5 }
  0x46   : > { %p1115_p8 = pnand %p1114_p4, %p1108_p13 }
  0x48   : > { %1118 = shalt.err (!%p1115_p8)
}
  0x49   : > { %s1194_s24 = smov 128   ;;  %s1195_s26 = smov 8  }
  0x4a   : > { %969 = dma.hbm_to_vmem [thread:$0]  (!%p1322_p11), %s1318_s25, 256, %s1320_s27, %s1326_s29, %s1194_s24, %s1194_s24, %s1195_s26  }
  0x4b   : > { %p1464_p0 = scmp.ne.s32.totalorder %s1459_s20, 0 }
  0x4c   : > { %s1350_s30 = sand.u32 (!%p1464_p0), 1, %s1179_s13   ;;  %p1465_p4 = scmp.ne.s32.totalorder (!%p1464_p0), %s1457_s18, 0 }
  0x4d   : > { %179 = sbr.rel (%p1464_p0) target bundleno = 787 (0x313), region = 32  ;;  %s881_s4 = sshll.u32 (!%p1464_p0), %s1350_s30, 4 }
  0x4e   : > { %s182_s5 = scalar_lea.sflag (!%p1464_p0), [#allocation3], %s1350_s30  ;;  %s1354_s6 = scalar_lea.vmem (!%p1464_p0), [#allocation2], %s881_s4 }
  0x52   : > { %1162 = dma.done.wait (%p1465_p4), %s182_s5, 256  }
  0x53   : > { %1164 = vsyncadd (%p1465_p4), %s182_s5, 4294967040  ;;  %p1466_p8 = scmp.eq.s32.totalorder %s1244_s16, 0 }
  0x55   : > { %1166 = dma.done.wait (%p1466_p8), [#allocation6], 14464   ;;  %p1467_p3 = pmov %p1466_p8 }
  0x56   : > { %v1196_v0 = vmov 0.0   ;;  %v326_v1 = vld [vmem:[#allocation5 + $0x350] sm:$0xff]  ;;  %v325_v2 = vld [vmem:[#allocation5 + $0x348] sm:$0xff]  ;;  %v319_v3 = vld [vmem:[#allocation5 + $0x318] sm:$0xff]  ;;  %vm638_vm0 = vcmask 23552   ;;  %s884_s18 = sshll.u32 %s1350_s30, 5 }
  0x57   : > { %1168 = vsyncadd (%p1467_p3), [#allocation6], 4294952832  ;;  %396 = vmatprep.mubr.f32.mxu0 %v1196_v0  ;;  %473 = vmatprep.mubr.f32.mxu1 %v1196_v0  ;;  %v318_v4 = vld [vmem:[#allocation5 + $0x310] sm:$0xff]  ;;  %v312_v5 = vld [vmem:[#allocation5 + $0x2e0] sm:$0xff]  ;;  %s215_s20 = scalar_lea.vmem [#allocation8], %s884_s18  ;;  %s893_s27 = sshll.u32 %s1244_s16, 9 }
  0x58   : > { %332 = vmatprep.subr.mxu0 %v326_v1  ;;  %v311_v6 = vld [vmem:[#allocation5 + $0x2d8] sm:$0xff]  ;;  %v305_v7 = vld [vmem:[#allocation5 + $0x2a8] sm:$0xff]  ;;  %v304_v8 = vld [vmem:[#allocation5 + $0x2a0] sm:$0xff]  ;;  %s780_s25 = sshll.u32 %s215_s20, 4  ;;  %s1406_s8 = scalar_lea.hbm %s1452_s3, %s893_s27  ;;  %s1401_s25 = int_to_ptr.vmem [resolvable:$true] %s780_s25 }
  0x59   : > { %333 = vmatpush1.msra.mxu0 %v325_v2  ;;  %v298_v9 = vld [vmem:[#allocation5 + $0x270] sm:$0xff]  ;;  %v297_v10 = vld [vmem:[#allocation5 + $0x268] sm:$0xff]  ;;  %v291_v11 = vld [vmem:[#allocation5 + $0x238] sm:$0xff]  ;;  %s766_s16 = scalar_lea.sflag [#allocation4], %s1350_s30  ;;  %s1119_s9 = scalar_lea.vmem %s1401_s25, 512 }
  0x5a   : > { %334 = vmatprep.subr.mxu0 %v319_v3  ;;  %v290_v12 = vld [vmem:[#allocation5 + $0x230] sm:$0xff]  ;;  %v284_v13 = vld [vmem:[#allocation5 + $0x200] sm:$0xff]  ;;  %v283_v14 = vld [vmem:[#allocation5 + $0x1f8] sm:$0xff]  ;;  %p1120_p11 = scmp.ne.s32.totalorder %s1401_s25, %s1119_s9  ;;  %p1468_p10 = scmp.ne.s32.totalorder %s1462_s10, 0 }
  0x5b   : > { %335 = vmatpush1.msra.mxu0 %v318_v4  ;;  %v277_v15 = vld [vmem:[#allocation5 + $0x1c8] sm:$0xff]  ;;  %v276_v16 = vld [vmem:[#allocation5 + $0x1c0] sm:$0xff]  ;;  %v270_v17 = vld [vmem:[#allocation5 + $0x190] sm:$0xff]  ;;  %s1200_s17 = smov [#allocation8]  }
  0x5c   : > { %336 = vmatprep.subr.mxu0 %v312_v5  ;;  %v269_v18 = vld [vmem:[#allocation5 + $0x188] sm:$0xff]  ;;  %v263_v19 = vld [vmem:[#allocation5 + $0x158] sm:$0xff]  ;;  %v262_v20 = vld [vmem:[#allocation5 + $0x150] sm:$0xff]  ;;  %p1121_p1 = pnand %p1120_p11, %p1468_p10  ;;  %s1123_s21 = sshll.u32 %s1200_s17, 4  ;;  %s1124_s21 = int_to_ptr.vmem [resolvable:$false] %s1123_s21 }
  0x5d   : > { %337 = vmatpush1.msra.mxu0 %v311_v6  ;;  %v256_v21 = vld [vmem:[#allocation5 + $0x120] sm:$0xff]  ;;  %v255_v22 = vld [vmem:[#allocation5 + $0x118] sm:$0xff]  ;;  %v249_v23 = vld [vmem:[#allocation5 + $0xe8] sm:$0xff]  ;;  %s1125_s22 = scalar_lea.vmem %s1124_s21, 1024  ;;  %p1126_p6 = scmp.lt.s32.totalorder %s1401_s25, %s1124_s21 }
  0x5e   : > { %338 = vmatprep.subr.mxu0 %v305_v7  ;;  %v248_v24 = vld [vmem:[#allocation5 + $0xe0] sm:$0xff]  ;;  %v242_v25 = vld [vmem:[#allocation5 + $0xb0] sm:$0xff]  ;;  %v241_v26 = vld [vmem:[#allocation5 + $0xa8] sm:$0xff]  ;;  %p1122_p2 = pneg %p1121_p1  ;;  %p1127_p12 = scmp.lt.s32.totalorder %s1125_s22, %s1119_s9 }
  0x5f   : > { %339 = vmatpush1.msra.mxu0 %v304_v8  ;;  %v235_v27 = vld [vmem:[#allocation5 + $0x78] sm:$0xff]  ;;  %v234_v28 = vld [vmem:[#allocation5 + $0x70] sm:$0xff]  ;;  %v228_v29 = vld [vmem:[#allocation5 + $0x40] sm:$0xff] }
  0x60   : > { %340 = vmatprep.subr.mxu0 %v298_v9  ;;  %v227_v30 = vld [vmem:[#allocation5 + $0x38] sm:$0xff]  ;;  %v221_v31 = vld [vmem:[#allocation5 + $0x8] sm:$0xff]  ;;  %v220_v32 = vld [vmem:[#allocation5] sm:$0xff]  ;;  %p1128_p7 = por %p1127_p12, %p1126_p6 }
  0x61   : > { %341 = vmatpush1.msra.mxu0 %v297_v10  ;;  %v1367_v33 = vld [vmem:[%s1354_s6] sm:$0xff]  ;;  %v1372_v34 = vld [vmem:[%s1354_s6 + $0x8] sm:$0xff] }
  0x62   : > { %342 = vmatprep.subr.mxu0 %v291_v11  ;;  %v328_v40 = vld [vmem:[#allocation5 + $0x360] sm:$0xff]  ;;  %v327_v41 = vld [vmem:[#allocation5 + $0x358] sm:$0xff]  ;;  %v321_v42 = vld [vmem:[#allocation5 + $0x328] sm:$0xff]  ;;  %p1129_p9 = pnand %p1128_p7, %p1122_p2 }
  0x63   : > { %343 = vmatpush1.msra.mxu0 %v290_v12  ;;  %409 = vmatprep.subr.mxu1 %v328_v40  ;;  %v320_v43 = vld [vmem:[#allocation5 + $0x320] sm:$0xff]  ;;  %v314_v44 = vld [vmem:[#allocation5 + $0x2f0] sm:$0xff]  ;;  %v313_v45 = vld [vmem:[#allocation5 + $0x2e8] sm:$0xff] }
  0x64   : > { %344 = vmatprep.subr.mxu0 %v284_v13  ;;  %410 = vmatpush1.msra.mxu1 %v327_v41  ;;  %v307_v46 = vld [vmem:[#allocation5 + $0x2b8] sm:$0xff]  ;;  %v306_v47 = vld [vmem:[#allocation5 + $0x2b0] sm:$0xff]  ;;  %v300_v48 = vld [vmem:[#allocation5 + $0x280] sm:$0xff] }
  0x65   : > { %345 = vmatpush1.msra.mxu0 %v283_v14  ;;  %411 = vmatprep.subr.mxu1 %v321_v42  ;;  %v299_v49 = vld [vmem:[#allocation5 + $0x278] sm:$0xff]  ;;  %v293_v50 = vld [vmem:[#allocation5 + $0x248] sm:$0xff]  ;;  %v292_v51 = vld [vmem:[#allocation5 + $0x240] sm:$0xff] }
  0x66   : > { %346 = vmatprep.subr.mxu0 %v277_v15  ;;  %412 = vmatpush1.msra.mxu1 %v320_v43  ;;  %v286_v52 = vld [vmem:[#allocation5 + $0x210] sm:$0xff]  ;;  %v329_v54 = vld [vmem:[#allocation5 + $0x368] sm:$0xff]  ;;  %v323_v56 = vld [vmem:[#allocation5 + $0x338] sm:$0xff] }
  0x67   : > { %347 = vmatpush1.msra.mxu0 %v276_v16  ;;  %413 = vmatprep.subr.mxu1 %v314_v44  ;;  %v330_v53 = vld [vmem:[#allocation5 + $0x370] sm:$0xff]  ;;  %v285_v55 = vld [vmem:[#allocation5 + $0x208] sm:$0xff]  ;;  %v279_v58 = vld [vmem:[#allocation5 + $0x1d8] sm:$0xff] }
  0x68   : > { %348 = vmatprep.subr.mxu0 %v270_v17  ;;  %414 = vmatpush1.msra.mxu1 %v313_v45  ;;  %v322_v57 = vld [vmem:[#allocation5 + $0x330] sm:$0xff]  ;;  %v316_v59 = vld [vmem:[#allocation5 + $0x300] sm:$0xff]  ;;  %v315_v61 = vld [vmem:[#allocation5 + $0x2f8] sm:$0xff] }
  0x69   : > { %349 = vmatpush1.msra.mxu0 %v269_v18  ;;  %415 = vmatprep.subr.mxu1 %v307_v46  ;;  %v278_v60 = vld [vmem:[#allocation5 + $0x1d0] sm:$0xff]  ;;  %v272_v62 = vld [vmem:[#allocation5 + $0x1a0] sm:$0xff]  ;;  %v309_v63 = vld [vmem:[#allocation5 + $0x2c8] sm:$0xff] }
  0x6a   : > { %350 = vmatprep.subr.mxu0 %v263_v19  ;;  %416 = vmatpush1.msra.mxu1 %v306_v47  ;;  %v271_v1 = vld [vmem:[#allocation5 + $0x198] sm:$0xff]  ;;  %v308_v2 = vld [vmem:[#allocation5 + $0x2c0] sm:$0xff]  ;;  %v265_v3 = vld [vmem:[#allocation5 + $0x168] sm:$0xff] }
  0x6b   : > { %351 = vmatpush1.msra.mxu0 %v262_v20  ;;  %417 = vmatprep.subr.mxu1 %v300_v48  ;;  %v302_v4 = vld [vmem:[#allocation5 + $0x290] sm:$0xff]  ;;  %v264_v5 = vld [vmem:[#allocation5 + $0x160] sm:$0xff]  ;;  %v301_v6 = vld [vmem:[#allocation5 + $0x288] sm:$0xff] }
  0x6c   : > { %352 = vmatprep.subr.mxu0 %v256_v21  ;;  %418 = vmatpush1.msra.mxu1 %v299_v49  ;;  %v258_v7 = vld [vmem:[#allocation5 + $0x130] sm:$0xff]  ;;  %v295_v8 = vld [vmem:[#allocation5 + $0x258] sm:$0xff]  ;;  %v257_v9 = vld [vmem:[#allocation5 + $0x128] sm:$0xff] }
  0x6d   : > { %353 = vmatpush1.msra.mxu0 %v255_v22  ;;  %419 = vmatprep.subr.mxu1 %v293_v50  ;;  %v294_v10 = vld [vmem:[#allocation5 + $0x250] sm:$0xff]  ;;  %v251_v11 = vld [vmem:[#allocation5 + $0xf8] sm:$0xff]  ;;  %v288_v12 = vld [vmem:[#allocation5 + $0x220] sm:$0xff] }
  0x6e   : > { %354 = vmatprep.subr.mxu0 %v249_v23  ;;  %420 = vmatpush1.msra.mxu1 %v292_v51  ;;  %v250_v13 = vld [vmem:[#allocation5 + $0xf0] sm:$0xff]  ;;  %v287_v14 = vld [vmem:[#allocation5 + $0x218] sm:$0xff]  ;;  %v244_v15 = vld [vmem:[#allocation5 + $0xc0] sm:$0xff] }
  0x6f   : > { %355 = vmatpush1.msra.mxu0 %v248_v24  ;;  %421 = vmatprep.subr.mxu1 %v286_v52  ;;  %v281_v16 = vld [vmem:[#allocation5 + $0x1e8] sm:$0xff]  ;;  %v243_v17 = vld [vmem:[#allocation5 + $0xb8] sm:$0xff]  ;;  %v280_v18 = vld [vmem:[#allocation5 + $0x1e0] sm:$0xff] }
  0x70   : > { %356 = vmatprep.subr.mxu0 %v242_v25  ;;  %422 = vmatpush1.msra.mxu1 %v285_v55  ;;  %v237_v19 = vld [vmem:[#allocation5 + $0x88] sm:$0xff]  ;;  %v274_v20 = vld [vmem:[#allocation5 + $0x1b0] sm:$0xff]  ;;  %v236_v21 = vld [vmem:[#allocation5 + $0x80] sm:$0xff] }
  0x71   : > { %357 = vmatpush1.msra.mxu0 %v241_v26  ;;  %423 = vmatprep.subr.mxu1 %v279_v58  ;;  %v273_v22 = vld [vmem:[#allocation5 + $0x1a8] sm:$0xff]  ;;  %v230_v23 = vld [vmem:[#allocation5 + $0x50] sm:$0xff]  ;;  %v267_v24 = vld [vmem:[#allocation5 + $0x178] sm:$0xff] }
  0x72   : > { %358 = vmatprep.subr.mxu0 %v235_v27  ;;  %424 = vmatpush1.msra.mxu1 %v278_v60  ;;  %v229_v25 = vld [vmem:[#allocation5 + $0x48] sm:$0xff]  ;;  %v266_v26 = vld [vmem:[#allocation5 + $0x170] sm:$0xff]  ;;  %v223_v27 = vld [vmem:[#allocation5 + $0x18] sm:$0xff] }
  0x73   : > { %359 = vmatpush1.msra.mxu0 %v234_v28  ;;  %425 = vmatprep.subr.mxu1 %v272_v62  ;;  %v260_v28 = vld [vmem:[#allocation5 + $0x140] sm:$0xff]  ;;  %v246_v40 = vld [vmem:[#allocation5 + $0xd0] sm:$0xff]  ;;  %v317_v41 = vld [vmem:[#allocation5 + $0x308] sm:$0xff] }
  0x74   : > { %360 = vmatprep.subr.mxu0 %v228_v29  ;;  %426 = vmatpush1.msra.mxu1 %v271_v1  ;;  %v222_v29 = vld [vmem:[#allocation5 + $0x10] sm:$0xff]  ;;  %v245_v42 = vld [vmem:[#allocation5 + $0xc8] sm:$0xff]  ;;  %v239_v43 = vld [vmem:[#allocation5 + $0x98] sm:$0xff] }
  0x75   : > { %361 = vmatpush1.msra.mxu0 %v227_v30  ;;  %427 = vmatprep.subr.mxu1 %v265_v3  ;;  %v259_v30 = vld [vmem:[#allocation5 + $0x138] sm:$0xff]  ;;  %v310_v44 = vld [vmem:[#allocation5 + $0x2d0] sm:$0xff]  ;;  %v232_v46 = vld [vmem:[#allocation5 + $0x60] sm:$0xff] }
  0x76   : > { %362 = vmatprep.subr.mxu0 %v221_v31  ;;  %428 = vmatpush1.msra.mxu1 %v264_v5  ;;  %v331_v31 = vld [vmem:[#allocation5 + $0x378] sm:$0xff]  ;;  %v238_v45 = vld [vmem:[#allocation5 + $0x90] sm:$0xff]  ;;  %v296_v49 = vld [vmem:[#allocation5 + $0x260] sm:$0xff] }
  0x77   : > { %363 = vmatpush1.msra.mxu0 %v220_v32  ;;  %429 = vmatprep.subr.mxu1 %v258_v7  ;;  %v253_v32 = vld [vmem:[#allocation5 + $0x108] sm:$0xff]  ;;  %v303_v47 = vld [vmem:[#allocation5 + $0x298] sm:$0xff]  ;;  %v224_v51 = vld [vmem:[#allocation5 + $0x20] sm:$0xff]  ;;  %v1197_v7 = vmov 1  }
  0x78   : > { %397 = vmatmul.mubr.f32.vlgmr.msra.gmra.mxu0 %v1367_v33  ;;  %486 = vmatprep.subr.mxu0 %v330_v53  ;;  %v231_v48 = vld [vmem:[#allocation5 + $0x58] sm:$0xff]  ;;  %v225_v50 = vld [vmem:[#allocation5 + $0x28] sm:$0xff]  ;;  %v282_v53 = vld [vmem:[#allocation5 + $0x1f0] sm:$0xff] }
  0x79   : > { %402 = vmatprep.mubr.f32.mxu0 %v1196_v0  ;;  %487 = vmatpush1.msra.mxu0 %v329_v54  ;;  %v289_v52 = vld [vmem:[#allocation5 + $0x228] sm:$0xff]  ;;  %v275_v54 = vld [vmem:[#allocation5 + $0x1b8] sm:$0xff]  ;;  %v268_v55 = vld [vmem:[#allocation5 + $0x180] sm:$0xff] }
  0x7a   : > { %488 = vmatprep.subr.mxu0 %v323_v56  ;;  %430 = vmatpush1.msra.mxu1 %v257_v9  ;;  %v261_v56 = vld [vmem:[#allocation5 + $0x148] sm:$0xff]  ;;  %v247_v58 = vld [vmem:[#allocation5 + $0xd8] sm:$0xff] }
  0x7b   : > { %489 = vmatpush1.msra.mxu0 %v322_v57  ;;  %431 = vmatprep.subr.mxu1 %v251_v11  ;;  %v254_v57 = vld [vmem:[#allocation5 + $0x110] sm:$0xff] }
  0x7c   : > { %403 = vmatmul.mubr.f32.gmra.mxu0 %v1372_v34  ;;  %490 = vmatprep.subr.mxu0 %v316_v59  ;;  %v240_v59 = vld [vmem:[#allocation5 + $0xa0] sm:$0xff] }
  0x7d   : > { %550 = vmatprep.mubr.f32.mxu0 %v1196_v0  ;;  %491 = vmatpush1.msra.mxu0 %v315_v61 }
  0x7e   : > { %492 = vmatprep.subr.mxu0 %v309_v63  ;;  %432 = vmatpush1.msra.mxu1 %v250_v13 }
  0x7f   : > { %493 = vmatpush1.msra.mxu0 %v308_v2  ;;  %433 = vmatprep.subr.mxu1 %v244_v15 }
  0x80   : > { %494 = vmatprep.subr.mxu0 %v302_v4  ;;  %434 = vmatpush1.msra.mxu1 %v243_v17 }
  0x81   : > { %495 = vmatpush1.msra.mxu0 %v301_v6  ;;  %435 = vmatprep.subr.mxu1 %v237_v19 }
  0x82   : > { %496 = vmatprep.subr.mxu0 %v295_v8  ;;  %436 = vmatpush1.msra.mxu1 %v236_v21  ;;  %v661_v21 = vld [vmem:[#allocation7] ss:$4 sm:$0x3] }
  0x83   : > { %497 = vmatpush1.msra.mxu0 %v294_v10  ;;  %437 = vmatprep.subr.mxu1 %v230_v23  ;;  %v1199_v10 = vmov 2   ;;  %v696_v23 = vld [vmem:[#allocation7 + $0x1] ss:$4 sm:$0x3] }
  0x84   : > { %498 = vmatprep.subr.mxu0 %v288_v12  ;;  %438 = vmatpush1.msra.mxu1 %v229_v25 }
  0x85   : > { %499 = vmatpush1.msra.mxu0 %v287_v14  ;;  %439 = vmatprep.subr.mxu1 %v223_v27  ;;  %v663_v14 = vlaneseq }
  0x86   : > { %500 = vmatprep.subr.mxu0 %v281_v16  ;;  %440 = vmatpush1.msra.mxu1 %v222_v29 }
  0x87   : > { %501 = vmatpush1.msra.mxu0 %v280_v18  ;;  %912 = vmatprep.subr.mxu1 %v331_v31  ;;  %v664_v17 = vshrl.u32 %v663_v14, 7 }
  0x88   : > { %502 = vmatprep.subr.mxu0 %v274_v20  ;;  %474 = vmatmul.mubr.f32.vlgmr.msra.gmra.mxu1 %v1367_v33 }
  0x89   : > { %503 = vmatpush1.msra.mxu0 %v273_v22  ;;  %913 = vmatpush3.msra.mxu1 %v331_v31  ;;  %v665_v19 = vsub.s32 0, %v664_v17  ;;  %v669_v20 = vsub.s32 1, %v664_v17 }
  0x8a   : > { %504 = vmatprep.subr.mxu0 %v267_v24  ;;  %479 = vmatprep.mubr.f32.mxu1 %v1196_v0 }
  0x8b   : > { %505 = vmatpush1.msra.mxu0 %v266_v26  ;;  %1025 = vset.pattern.permute.xlu1 %v1197_v7  ;;  %v705_v24 = vrot.slane %v696_v23, %v669_v20  ;;  %v729_v26 = vld [vmem:[#allocation7 + $0x2] ss:$4 sm:$0x3]  ;;  %v670_v29 = vrot.slane %v661_v21, %v669_v20 }
  0x8c   : > { %506 = vmatprep.subr.mxu0 %v260_v28  ;;  %480 = vmatmul.mubr.f32.gmra.mxu1 %v1372_v34  ;;  %v666_v28 = vrot.slane %v661_v21, %v665_v19  ;;  %v738_v31 = vrot.slane %v729_v26, %v669_v20 }
  0x8d   : > { %507 = vmatpush1.msra.mxu0 %v259_v30  ;;  %944 = vmatprep.mubr.f32.mxu1 %v1367_v33  ;;  %v701_v30 = vrot.slane %v696_v23, %v665_v19 }
  0x8e   : > { %508 = vmatprep.subr.mxu0 %v253_v32  ;;  %v734_v32 = vrot.slane %v729_v26, %v665_v19 }
 0x138   : > { %v1376_v35 = vpop.f32.mrf.mxu0 }
 0x139   : > { %v639_v36 = vsel %vm638_vm0, %v1376_v35, -inf }
 0x13a   : > { %640 = vmax.xlane.f32.xlu0 %v639_v36  ;;  %v1380_v37 = vpop.f32.mrf.mxu0  ;;  %v324_v36 = vld [vmem:[#allocation5 + $0x340] sm:$0xff] }
 0x13b   : > { %914 = vmatprep.subr.mxu1 %v324_v36 }
 0x13c   : > { %v1382_v38 = vpop.f32.mrf.mxu0  ;;  %915 = vmatpush3.msra.mxu1 %v324_v36 }
 0x13d   : > { %v642_v39 = vsel %vm638_vm0, %v1382_v38, -inf  ;;  %916 = vmatprep.subr.mxu1 %v317_v41 }
 0x13e   : > { %643 = vmax.xlane.f32.xlu0 %v642_v39  ;;  %v252_v39 = vld [vmem:[#allocation5 + $0x100] sm:$0xff]  ;;  %917 = vmatpush3.msra.mxu1 %v317_v41  ;;  %v406_v22 = vpop.f32.mrf.mxu0  ;;  %v673_v41 = vsub.f32 %v1380_v37, %v666_v28 }
 0x13f   : > { %509 = vmatpush1.msra.mxu0 %v252_v39  ;;  %918 = vmatprep.subr.mxu1 %v310_v44 }
 0x140   : > { %510 = vmatprep.subr.mxu0 %v246_v40  ;;  %919 = vmatpush3.msra.mxu1 %v310_v44 }
 0x141   : > { %511 = vmatpush1.msra.mxu0 %v245_v42  ;;  %920 = vmatprep.subr.mxu1 %v303_v47 }
 0x142   : > { %512 = vmatprep.subr.mxu0 %v239_v43  ;;  %921 = vmatpush3.msra.mxu1 %v303_v47 }
 0x143   : > { %513 = vmatpush1.msra.mxu0 %v238_v45  ;;  %922 = vmatprep.subr.mxu1 %v296_v49 }
 0x144   : > { %514 = vmatprep.subr.mxu0 %v232_v46  ;;  %923 = vmatpush3.msra.mxu1 %v296_v49 }
 0x145   : > { %515 = vmatpush1.msra.mxu0 %v231_v48  ;;  %924 = vmatprep.subr.mxu1 %v289_v52 }
 0x146   : > { %516 = vmatprep.subr.mxu0 %v225_v50  ;;  %925 = vmatpush3.msra.mxu1 %v289_v52 }
 0x147   : > { %517 = vmatpush1.msra.mxu0 %v224_v51  ;;  %926 = vmatprep.subr.mxu1 %v282_v53 }
 0x148   : > { %551 = vmatmul.mubr.f32.vlgmr.msra.gmra.mxu0 %v1367_v33  ;;  %927 = vmatpush3.msra.mxu1 %v282_v53  ;;  %v233_v33 = vld [vmem:[#allocation5 + $0x68] sm:$0xff]  ;;  %v475_v13 = vpop.f32.mrf.mxu1 }
 0x149   : > { %556 = vmatprep.mubr.f32.mxu0 %v1196_v0  ;;  %928 = vmatprep.subr.mxu1 %v275_v54  ;;  %v226_v0 = vld [vmem:[#allocation5 + $0x30] sm:$0xff]  ;;  %v674_v42 = vsub.f32 %v475_v13, %v670_v29 }
 0x14a   : > { %929 = vmatpush3.msra.mxu1 %v275_v54  ;;  %v477_v15 = vpop.f32.mrf.mxu1 }
 0x14b   : > { %930 = vmatprep.subr.mxu1 %v268_v55  ;;  %v708_v43 = vsub.f32 %v477_v15, %v701_v30 }
 0x14c   : > { %557 = vmatmul.mubr.f32.gmra.mxu0 %v1372_v34  ;;  %931 = vmatpush3.msra.mxu1 %v268_v55  ;;  %v481_v16 = vpop.f32.mrf.mxu1 }
 0x14d   : > { %932 = vmatprep.subr.mxu1 %v261_v56 }
 0x14e   : > { %933 = vmatpush3.msra.mxu1 %v261_v56  ;;  %v483_v18 = vpop.f32.mrf.mxu1 }
 0x14f   : > { %934 = vmatprep.subr.mxu1 %v254_v57 }
 0x150   : > { %935 = vmatpush3.msra.mxu1 %v254_v57 }
 0x151   : > { %936 = vmatprep.subr.mxu1 %v247_v58 }
 0x152   : > { %937 = vmatpush3.msra.mxu1 %v247_v58 }
 0x153   : > { %938 = vmatprep.subr.mxu1 %v240_v59 }
 0x154   : > { %939 = vmatpush3.msra.mxu1 %v240_v59 }
 0x155   : > { %940 = vmatprep.subr.mxu1 %v233_v33 }
 0x156   : > { %941 = vmatpush3.msra.mxu1 %v233_v33  ;;  %v710_v33 = vsub.f32 %v483_v18, %v701_v30 }
 0x157   : > { %942 = vmatprep.subr.mxu1 %v226_v0 }
 0x158   : > { %943 = vmatpush3.msra.mxu1 %v226_v0 }
 0x159   : > { %945 = vmatmul.mubr.f32.vlgmr.msra.gmra.mxu1 %v1372_v34  ;;  %v1198_v34 = vmov 0  }
 0x15a   : > { %1024 = vset.pattern.permute.xlu0 %v1198_v34 }
 0x1c3   : > { %v641_v60 = vpop.xlane.xlu0 %640 }
 0x1c4   : > { %v645_v61 = vsub.f32 %v1376_v35, %v641_v60  ;;  %v676_v60 = vsub.f32 %v481_v16, %v670_v29 }
 0x1c6   : > { %v647_v62 = vmul.f32 1.442695, %v645_v61 }
 0x1c7   : > { %v644_v63 = vpop.xlane.xlu0 %643 }
 0x1c8   : > { %1031 = vpow2.f32 %v647_v62  ;;  %v646_v1 = vsub.f32 %v1382_v38, %v644_v63  ;;  %v675_v63 = vsub.f32 %v406_v22, %v666_v28 }
 0x1ca   : > { %v649_v2 = vmul.f32 1.442695, %v646_v1 }
 0x1cc   : > { %1033 = vpow2.f32 %v649_v2 }
 0x1d5   : > { %v1032_v3 = vpop.eup %1031 }
 0x1d6   : > { %v651_v4 = vsel %vm638_vm0, %v1032_v3, 0.0 }
 0x1d7   : > { %652 = vadd.xlane.f32.xlu1 %v651_v4 }
 0x1d9   : > { %v1034_v5 = vpop.eup %1033 }
 0x1da   : > { %v654_v6 = vsel %vm638_vm0, %v1034_v5, 0.0 }
 0x1db   : > { %655 = vadd.xlane.f32.xlu1 %v654_v6 }
 0x208   : > { %v552_v27 = vpop.f32.mrf.mxu0 }
 0x209   : > { %v709_v36 = vsub.f32 %v552_v27, %v705_v24 }
 0x20a   : > { %v554_v39 = vpop.f32.mrf.mxu0 }
 0x20b   : > { %v741_v46 = vsub.f32 %v554_v39, %v734_v32 }
 0x20c   : > { %v558_v59 = vpop.f32.mrf.mxu0 }
 0x20d   : > { %v711_v0 = vsub.f32 %v558_v59, %v705_v24 }
 0x20e   : > { %v560_v62 = vpop.f32.mrf.mxu0 }
 0x20f   : > { %v743_v6 = vsub.f32 %v560_v62, %v734_v32 }
 0x219   : > { %v946_v25 = vpop.f32.mrf.mxu1 }
 0x21b   : > { %v629_v40 = vpop.f32.mrf.mxu1 }
 0x21c   : > { %v742_v47 = vsub.f32 %v629_v40, %v738_v31 }
 0x260   : > { %v653_v35 = vpop.xlane.xlu1 %652 }
 0x261   : > { %1035 = vrcp.f32 %v653_v35 }
 0x264   : > { %v656_v8 = vpop.xlane.xlu1 %655 }
 0x265   : > { %1037 = vrcp.f32 %v656_v8 }
 0x26e   : > { %v1036_v9 = vpop.eup %1035 }
 0x26f   : > { %v658_v38 = vmul.f32 %v1036_v9, %v1032_v3  ;;  %v744_v3 = vsub.f32 %v946_v25, %v738_v31 }
 0x271   : > { %679 = vperm.xlu0 %1024, %v658_v38   ;;  %713 = vperm.xlu1 %1025, %v658_v38  }
 0x272   : > { %v1038_v11 = vpop.eup %1037 }
 0x273   : > { %v660_v12 = vmul.f32 %v1038_v11, %v1034_v5 }
 0x275   : > { %1026 = vset.pattern.permute.xlu1 %v1199_v10  ;;  %1030 = vset.pattern.permute.xlu0 %v1199_v10 }
 0x276   : > { %746 = vperm.xlu1 %1026, %v658_v38  }
 0x27a   : > { %1027 = vset.pattern.permute.xlu1 %v1198_v34 }
 0x27b   : > { %684 = vperm.xlu1 %1027, %v660_v12  }
 0x27f   : > { %1028 = vset.pattern.permute.xlu1 %v1197_v7 }
 0x280   : > { %717 = vperm.xlu1 %1028, %v660_v12  }
 0x284   : > { %1029 = vset.pattern.permute.xlu1 %v1199_v10 }
 0x285   : > { %750 = vperm.xlu1 %1029, %v660_v12  }
 0x2ec   : > { %v714_v44 = vpop.permute.xlu1 %713  ;;  %v680_v45 = vpop.permute.xlu0 %679 }
 0x2ed   : > { %v720_v48 = vmul.f32 %v714_v44, %v708_v43  ;;  %v721_v49 = vmul.f32 %v714_v44, %v709_v36  ;;  %v687_v50 = vmul.f32 %v680_v45, %v673_v41  ;;  %v688_v51 = vmul.f32 %v680_v45, %v674_v42 }
 0x2ef   : > { %v724_v53 = vadd.f32 %v720_v48, %v687_v50  ;;  %v725_v54 = vadd.f32 %v721_v49, %v688_v51 }
 0x2f1   : > { %v747_v52 = vpop.permute.xlu1 %746 }
 0x2f2   : > { %v753_v55 = vmul.f32 %v747_v52, %v741_v46  ;;  %v754_v56 = vmul.f32 %v747_v52, %v742_v47 }
 0x2f4   : > { %v757_v57 = vadd.f32 %v753_v55, %v724_v53  ;;  %v758_v58 = vadd.f32 %v754_v56, %v725_v54 }
 0x2f6   : > { %761 = vst [vmem:[%s215_s20] sm:$0xff] %v757_v57  ;;  %762 = vst [vmem:[%s215_s20 + $0x8] sm:$0xff] %v758_v58  ;;  %v685_v37 = vpop.permute.xlu1 %684 }
 0x2f7   : > { %v689_v4 = vmul.f32 %v685_v37, %v675_v63  ;;  %v690_v5 = vmul.f32 %v685_v37, %v676_v60 }
 0x2fb   : > { %v718_v61 = vpop.permute.xlu1 %717 }
 0x2fc   : > { %v722_v1 = vmul.f32 %v718_v61, %v710_v33  ;;  %v723_v2 = vmul.f32 %v718_v61, %v711_v0 }
 0x2fe   : > { %v726_v34 = vadd.f32 %v722_v1, %v689_v4  ;;  %v727_v35 = vadd.f32 %v723_v2, %v690_v5 }
 0x300   : > { %v751_v7 = vpop.permute.xlu1 %750 }
 0x301   : > { %v755_v8 = vmul.f32 %v751_v7, %v743_v6  ;;  %v756_v9 = vmul.f32 %v751_v7, %v744_v3 }
 0x303   : > { %v759_v38 = vadd.f32 %v755_v8, %v726_v34  ;;  %v760_v10 = vadd.f32 %v756_v9, %v727_v35 }
 0x305   : > { %763 = vst [vmem:[%s215_s20 + $0x10] sm:$0xff] %v759_v38  ;;  %764 = vst [vmem:[%s215_s20 + $0x18] sm:$0xff] %v760_v10 }
 0x306   : > { %1132 = shalt.err (!%p1129_p9)
}
 0x307   : > { %s1133_s23 = scalar_lea.hbm %s1406_s8, 512  ;;  %s1137_s4 = scalar_lea.hbm %s1452_s3, 1024 }
 0x308   : > { %p1134_p13 = scmp.ne.s32.totalorder %s1406_s8, %s1133_s23  ;;  %p1138_p4 = scmp.lt.s32.totalorder %s1406_s8, %s1452_s3 }
 0x309   : > { %p1139_p8 = scmp.lt.s32.totalorder %s1137_s4, %s1133_s23 }
 0x30a   : > { %p1135_p5 = pnand %p1134_p13, %p1468_p10 }
 0x30b   : > { %p1140_p3 = por %p1139_p8, %p1138_p4 }
 0x30c   : > { %p1136_p0 = pneg %p1135_p5 }
 0x30e   : > { %p1141_p11 = pnand %p1140_p3, %p1136_p0 }
 0x310   : > { %1144 = shalt.err (!%p1141_p11)
}
 0x311   : > { %s1201_s18 = smov 256   ;;  %s1202_s20 = smov 16  }
 0x312   : > { %957 = dma.vmem_to_hbm [thread:$0]  (%p1468_p10), %s1401_s25, 512, %s1406_s8, %s766_s16, %s1201_s18, %s1201_s18, %s1202_s20  }
 0x313 PF: > { %s795_s27 = sand.u32 1, %s1175_s12   ;;  %p1469_p1 = scmp.ne.s32.totalorder %s1458_s19, 0 }
 0x314   : > { %p1470_p2 = scmp.ge.s32.totalorder %s1187_s15, 2  ;;  %s796_s28 = scalar_lea.sflag [#allocation4], %s795_s27 }
 0x316   : > { %p971_p6 = pnand %p1470_p2, %p1469_p1 }
 0x318   : > { %p972_p12 = pneg %p971_p6 }
 0x31a   : > { %1170 = dma.done.wait (%p972_p12), %s796_s28, 512  }
 0x31b   : > { %1172 = vsyncadd (%p972_p12), %s796_s28, 4294966784  ;;  %p17_p7 = scmp.ge.s32.totalorder %s1295_s7, 4   ;;  %s1471_s12 = smov %s1179_s13 }
 0x31c   : > { %s1472_s13 = smov %s1183_s14  ;;  %s1473_s14 = smov %s1311_s11 }
 0x31d   : > { %s1474_s15 = smov %s1295_s7  ;;  %19 = sbr.rel (!%p17_p7) target bundleno = 6 (0x6), region = 87 }
 0x322   :  { %801 = vsyncpa [#allocation3], 1 }
 0x323   :  { %803 = vsyncpa [#allocation3 + $0x1], 1 }
 0x324   :  { %804 = vsyncpa [#allocation6], 1 }
 0x325   :  { %805 = vsyncpa [#allocation4], 1 }
 0x326   :  { %807 = vsyncpa [#allocation4 + $0x1], 1 }

</bundles_post_ra>
